<compile_context>
chip_gen: v7x
topology: tpu7x:2x2x1
jax: 0.10.0
libtpu: 0.0.40
codegen_flags: <defaults>
</compile_context>

<pallas_src>
import jax
import jax.numpy as jnp
from jax.experimental import pallas as pl
from jax.experimental.pallas import tpu as pltpu

H = 25     # nn.LSTMCell(emb_dim, 25) hidden size (== emb_dim, see layout note above)
HP = 128   # per-gate lane padding: each gate gets its own 128-lane (one-vreg) block


def lstm_encoder_kernel(x_ref, emb_ref, wih_ref, whh_ref, b_ref, out_ref):
    """Single-invocation kernel: embedding matmul + sequential LSTMCell recurrence.

    x_ref:   (S, V)       float32  input rows
    emb_ref: (V, E)       float32  embedding matrix (E == H == 25)
    wih_ref: (E, 4*HP)    float32  input->gate weights, gate k at lanes [128k, 128k+H)
    whh_ref: (HP, 4*HP)   float32  hidden->gate weights, same column layout, rows >= H zero
    b_ref:   (1, 4*HP)    float32  b_ih + b_hh, same column layout
    out_ref: (S, HP)      float32  stacked hidden states (useful data in lanes 0..H-1)
    """
    S = out_ref.shape[0]

    # Prologue (MXU, outside the recurrence): embedding + full input projection + bias.
    embs = jnp.dot(x_ref[...], emb_ref[...], preferred_element_type=jnp.float32)   # (S, E)
    gates_x = (
        jnp.dot(embs, wih_ref[...], preferred_element_type=jnp.float32) + b_ref[...]
    )                                                                               # (S, 4*HP)

    # Pre-split per-timestep rows so the sublane extraction is hoisted off the serial chain.
    gx = [gates_x[t:t + 1, :] for t in range(S)]                                    # S x (1, 4*HP)

    # Recurrent weights loaded once, live in vregs across the whole unrolled loop.
    whh = whh_ref[...]                                                              # (HP, 4*HP)

    h = jnp.zeros((1, HP), jnp.float32)
    c = jnp.zeros((1, HP), jnp.float32)

    # Serial recurrence, fully unrolled. Per step: 1 MXU op, lane-aligned (zero-XLU) gate
    # slices, 3 sigmoid + 2 tanh EUP pushes, a handful of VPU ops, one off-chain row store.
    for t in range(S):
        gates = gx[t] + jnp.dot(h, whh, preferred_element_type=jnp.float32)         # (1, 4*HP)

        # Each slice starts at a 128-lane (vreg) boundary -> pure vreg selection, no rotate.
        i_g = jax.nn.sigmoid(gates[:, 0 * HP:1 * HP])
        f_g = jax.nn.sigmoid(gates[:, 1 * HP:2 * HP])
        g_g = jnp.tanh(gates[:, 2 * HP:3 * HP])
        o_g = jax.nn.sigmoid(gates[:, 3 * HP:4 * HP])

        c = f_g * c + i_g * g_g
        h = o_g * jnp.tanh(c)

        # Row store is independent of the next step's recurrence -> hides under its work.
        out_ref[pl.ds(t, 1), :] = h


def my_model_forward(inputs, emb_mat, w_ih, w_hh, b_ih, b_hh):
    """inputs: (S, V) f32; emb_mat: (V, E) f32; LSTMCell params in torch layout:
    w_ih (4H, E), w_hh (4H, H), b_ih (4H,), b_hh (4H,). Returns (S, H) f32."""
    S, V = inputs.shape
    E = emb_mat.shape[1]
    assert E == H, "PyTorch module requires emb_dim == 25 (hx/cx init uses emb_dim)"

    def pad_gate_cols(w):
        # (rows, 4H) with torch gate order [i|f|g|o] -> (rows, 4*HP), gate k at lane 128*k.
        parts = []
        for k in range(4):
            blk = w[:, k * H:(k + 1) * H]
            parts.append(jnp.pad(blk, ((0, 0), (0, HP - H))))
        return jnp.concatenate(parts, axis=1)

    wih_pad = pad_gate_cols(jnp.transpose(w_ih))                            # (E, 4*HP)
    whh_pad = jnp.pad(pad_gate_cols(jnp.transpose(w_hh)),
                      ((0, HP - H), (0, 0)))                                # (HP, 4*HP)
    b_pad = pad_gate_cols((b_ih + b_hh).reshape(1, 4 * H))                  # (1, 4*HP)

    cost = pl.CostEstimate(
        flops=2 * S * V * E + 2 * S * E * 4 * HP + 2 * S * HP * 4 * HP,
        transcendentals=5 * S * HP,
        bytes_accessed=4 * (S * V + V * E + E * 4 * HP + HP * 4 * HP + 4 * HP + S * HP),
    )

    vm = pl.BlockSpec(memory_space=pltpu.MemorySpace.VMEM)
    out_padded = pl.pallas_call(
        lstm_encoder_kernel,
        out_shape=jax.ShapeDtypeStruct((S, HP), jnp.float32),
        in_specs=[vm, vm, vm, vm, vm],
        out_specs=vm,
        cost_estimate=cost,
    )(inputs, emb_mat, wih_pad, whh_pad, b_pad)
    return out_padded[:, :H]


def reference_forward(inputs, emb_mat, w_ih, w_hh, b_ih, b_hh):
    """Pure-JAX reference mirroring torch LSTMCell semantics (gate order i, f, g, o)."""
    embs = inputs @ emb_mat
    S = embs.shape[0]
    h = jnp.zeros((1, H), jnp.float32)
    c = jnp.zeros((1, H), jnp.float32)
    outs = []
    for t in range(S):
        x_t = embs[t:t + 1, :]
        gates = x_t @ w_ih.T + h @ w_hh.T + b_ih + b_hh
        i_g = jax.nn.sigmoid(gates[:, 0 * H:1 * H])
        f_g = jax.nn.sigmoid(gates[:, 1 * H:2 * H])
        g_g = jnp.tanh(gates[:, 2 * H:3 * H])
        o_g = jax.nn.sigmoid(gates[:, 3 * H:4 * H])
        c = f_g * c + i_g * g_g
        h = o_g * jnp.tanh(c)
        outs.append(h)
    return jnp.concatenate(outs, axis=0)


if __name__ == "__main__":
    S, V, E = 8, 40, H  # seq=8, vocab=40, emb_dim = hidden = 25

    key = jax.random.PRNGKey(0)
    k_in, k_emb, k_wih, k_whh, k_bih, k_bhh = jax.random.split(key, 6)

    inputs = jax.random.normal(k_in, (S, V), dtype=jnp.float32)
    emb_mat = jax.random.normal(k_emb, (V, E), dtype=jnp.float32) * 0.1

    # Deterministic LSTMCell init (torch-style uniform(-k, k), k = 1/sqrt(hidden)).
    bound = 1.0 / jnp.sqrt(jnp.float32(H))
    w_ih = jax.random.uniform(k_wih, (4 * H, E), jnp.float32, -bound, bound)
    w_hh = jax.random.uniform(k_whh, (4 * H, H), jnp.float32, -bound, bound)
    b_ih = jax.random.uniform(k_bih, (4 * H,), jnp.float32, -bound, bound)
    b_hh = jax.random.uniform(k_bhh, (4 * H,), jnp.float32, -bound, bound)

    out = my_model_forward(inputs, emb_mat, w_ih, w_hh, b_ih, b_hh)
    out = jax.block_until_ready(out)

    ref = reference_forward(inputs, emb_mat, w_ih, w_hh, b_ih, b_hh)
    assert out.shape == (S, H)
    assert jnp.allclose(out, ref, atol=1e-5, rtol=1e-5), "mismatch vs reference"

    print("KERNEL_OK")
</pallas_src>

<mosaic_0001>
module attributes {stable_mosaic.version = 11 : i64} {
  func.func @lstm_encoder_kernel(%arg0: memref<8x40xf32, #tpu.memory_space<vmem>>, %arg1: memref<40x25xf32, #tpu.memory_space<vmem>>, %arg2: memref<25x512xf32, #tpu.memory_space<vmem>>, %arg3: memref<128x512xf32, #tpu.memory_space<vmem>>, %arg4: memref<1x512xf32, #tpu.memory_space<vmem>>, %arg5: memref<8x128xf32, #tpu.memory_space<vmem>>) attributes {dimension_semantics = [], scalar_prefetch = 0 : i64, scratch_operands = 0 : i64, tpu.core_type = #tpu.core_type<tc>} {
    %c0 = arith.constant 0 : index
    %c0_0 = arith.constant 0 : index
    %0 = vector.load %arg0[%c0, %c0_0] : memref<8x40xf32, #tpu.memory_space<vmem>>, vector<8x40xf32>
    %c0_1 = arith.constant 0 : index
    %c0_2 = arith.constant 0 : index
    %1 = vector.load %arg1[%c0_1, %c0_2] : memref<40x25xf32, #tpu.memory_space<vmem>>, vector<40x25xf32>
    %cst = arith.constant dense<0.000000e+00> : vector<8x25xf32>
    %2 = tpu.matmul %0, %1, %cst {dimension_numbers = #tpu.dot_dimension_numbers<[1], [0], [0], [1], [0, 0, 1, 1], [], []>} : vector<8x40xf32>, vector<40x25xf32>, vector<8x25xf32> -> vector<8x25xf32>
    %c0_3 = arith.constant 0 : index
    %c0_4 = arith.constant 0 : index
    %3 = vector.load %arg2[%c0_3, %c0_4] : memref<25x512xf32, #tpu.memory_space<vmem>>, vector<25x512xf32>
    %cst_5 = arith.constant dense<0.000000e+00> : vector<8x512xf32>
    %4 = tpu.matmul %2, %3, %cst_5 {dimension_numbers = #tpu.dot_dimension_numbers<[1], [0], [0], [1], [0, 0, 1, 1], [], []>} : vector<8x25xf32>, vector<25x512xf32>, vector<8x512xf32> -> vector<8x512xf32>
    %c0_6 = arith.constant 0 : index
    %c0_7 = arith.constant 0 : index
    %5 = vector.load %arg4[%c0_6, %c0_7] : memref<1x512xf32, #tpu.memory_space<vmem>>, vector<1x512xf32>
    %6 = vector.broadcast %5 : vector<1x512xf32> to vector<8x512xf32>
    %7 = arith.addf %4, %6 : vector<8x512xf32>
    %8 = vector.extract_strided_slice %7 {offsets = [0, 0], sizes = [1, 512], strides = [1, 1]} : vector<8x512xf32> to vector<1x512xf32>
    %9 = vector.extract_strided_slice %7 {offsets = [1, 0], sizes = [1, 512], strides = [1, 1]} : vector<8x512xf32> to vector<1x512xf32>
    %10 = vector.extract_strided_slice %7 {offsets = [2, 0], sizes = [1, 512], strides = [1, 1]} : vector<8x512xf32> to vector<1x512xf32>
    %11 = vector.extract_strided_slice %7 {offsets = [3, 0], sizes = [1, 512], strides = [1, 1]} : vector<8x512xf32> to vector<1x512xf32>
    %12 = vector.extract_strided_slice %7 {offsets = [4, 0], sizes = [1, 512], strides = [1, 1]} : vector<8x512xf32> to vector<1x512xf32>
    %13 = vector.extract_strided_slice %7 {offsets = [5, 0], sizes = [1, 512], strides = [1, 1]} : vector<8x512xf32> to vector<1x512xf32>
    %14 = vector.extract_strided_slice %7 {offsets = [6, 0], sizes = [1, 512], strides = [1, 1]} : vector<8x512xf32> to vector<1x512xf32>
    %15 = vector.extract_strided_slice %7 {offsets = [7, 0], sizes = [1, 512], strides = [1, 1]} : vector<8x512xf32> to vector<1x512xf32>
    %c0_8 = arith.constant 0 : index
    %c0_9 = arith.constant 0 : index
    %16 = vector.load %arg3[%c0_8, %c0_9] : memref<128x512xf32, #tpu.memory_space<vmem>>, vector<128x512xf32>
    %cst_10 = arith.constant 0.000000e+00 : f32
    %17 = vector.broadcast %cst_10 : f32 to vector<1x128xf32>
    %cst_11 = arith.constant 0.000000e+00 : f32
    %18 = vector.broadcast %cst_11 : f32 to vector<1x128xf32>
    %cst_12 = arith.constant dense<0.000000e+00> : vector<1x512xf32>
    %19 = tpu.matmul %17, %16, %cst_12 {dimension_numbers = #tpu.dot_dimension_numbers<[1], [0], [0], [1], [0, 0, 1, 1], [], []>} : vector<1x128xf32>, vector<128x512xf32>, vector<1x512xf32> -> vector<1x512xf32>
    %20 = arith.addf %8, %19 : vector<1x512xf32>
    %21 = vector.extract_strided_slice %20 {offsets = [0, 0], sizes = [1, 128], strides = [1, 1]} : vector<1x512xf32> to vector<1x128xf32>
    %22 = arith.negf %21 : vector<1x128xf32>
    %23 = math.exp %22 : vector<1x128xf32>
    %cst_13 = arith.constant 1.000000e+00 : f32
    %24 = vector.broadcast %cst_13 : f32 to vector<1x128xf32>
    %25 = arith.addf %24, %23 : vector<1x128xf32>
    %26 = arith.divf %24, %25 : vector<1x128xf32>
    %27 = vector.extract_strided_slice %20 {offsets = [0, 128], sizes = [1, 128], strides = [1, 1]} : vector<1x512xf32> to vector<1x128xf32>
    %28 = arith.negf %27 : vector<1x128xf32>
    %29 = math.exp %28 : vector<1x128xf32>
    %cst_14 = arith.constant 1.000000e+00 : f32
    %30 = vector.broadcast %cst_14 : f32 to vector<1x128xf32>
    %31 = arith.addf %30, %29 : vector<1x128xf32>
    %32 = arith.divf %30, %31 : vector<1x128xf32>
    %33 = vector.extract_strided_slice %20 {offsets = [0, 256], sizes = [1, 128], strides = [1, 1]} : vector<1x512xf32> to vector<1x128xf32>
    %34 = math.tanh %33 : vector<1x128xf32>
    %35 = vector.extract_strided_slice %20 {offsets = [0, 384], sizes = [1, 128], strides = [1, 1]} : vector<1x512xf32> to vector<1x128xf32>
    %36 = arith.negf %35 : vector<1x128xf32>
    %37 = math.exp %36 : vector<1x128xf32>
    %cst_15 = arith.constant 1.000000e+00 : f32
    %38 = vector.broadcast %cst_15 : f32 to vector<1x128xf32>
    %39 = arith.addf %38, %37 : vector<1x128xf32>
    %40 = arith.divf %38, %39 : vector<1x128xf32>
    %41 = arith.mulf %32, %18 : vector<1x128xf32>
    %42 = arith.mulf %26, %34 : vector<1x128xf32>
    %43 = arith.addf %41, %42 : vector<1x128xf32>
    %44 = math.tanh %43 : vector<1x128xf32>
    %45 = arith.mulf %40, %44 : vector<1x128xf32>
    %c0_16 = arith.constant 0 : index
    %c0_17 = arith.constant 0 : index
    %46 = vector.load %arg5[%c0_16, %c0_17] : memref<8x128xf32, #tpu.memory_space<vmem>>, vector<1x128xf32>
    tpu.vector_store %arg5[%c0_16, %c0_17], %45 {strides = array<i32>} : memref<8x128xf32, #tpu.memory_space<vmem>>, vector<1x128xf32>,
    %cst_18 = arith.constant dense<0.000000e+00> : vector<1x512xf32>
    %47 = tpu.matmul %45, %16, %cst_18 {dimension_numbers = #tpu.dot_dimension_numbers<[1], [0], [0], [1], [0, 0, 1, 1], [], []>} : vector<1x128xf32>, vector<128x512xf32>, vector<1x512xf32> -> vector<1x512xf32>
    %48 = arith.addf %9, %47 : vector<1x512xf32>
    %49 = vector.extract_strided_slice %48 {offsets = [0, 0], sizes = [1, 128], strides = [1, 1]} : vector<1x512xf32> to vector<1x128xf32>
    %50 = arith.negf %49 : vector<1x128xf32>
    %51 = math.exp %50 : vector<1x128xf32>
    %cst_19 = arith.constant 1.000000e+00 : f32
    %52 = vector.broadcast %cst_19 : f32 to vector<1x128xf32>
    %53 = arith.addf %52, %51 : vector<1x128xf32>
    %54 = arith.divf %52, %53 : vector<1x128xf32>
    %55 = vector.extract_strided_slice %48 {offsets = [0, 128], sizes = [1, 128], strides = [1, 1]} : vector<1x512xf32> to vector<1x128xf32>
    %56 = arith.negf %55 : vector<1x128xf32>
    %57 = math.exp %56 : vector<1x128xf32>
    %cst_20 = arith.constant 1.000000e+00 : f32
    %58 = vector.broadcast %cst_20 : f32 to vector<1x128xf32>
    %59 = arith.addf %58, %57 : vector<1x128xf32>
    %60 = arith.divf %58, %59 : vector<1x128xf32>
    %61 = vector.extract_strided_slice %48 {offsets = [0, 256], sizes = [1, 128], strides = [1, 1]} : vector<1x512xf32> to vector<1x128xf32>
    %62 = math.tanh %61 : vector<1x128xf32>
    %63 = vector.extract_strided_slice %48 {offsets = [0, 384], sizes = [1, 128], strides = [1, 1]} : vector<1x512xf32> to vector<1x128xf32>
    %64 = arith.negf %63 : vector<1x128xf32>
    %65 = math.exp %64 : vector<1x128xf32>
    %cst_21 = arith.constant 1.000000e+00 : f32
    %66 = vector.broadcast %cst_21 : f32 to vector<1x128xf32>
    %67 = arith.addf %66, %65 : vector<1x128xf32>
    %68 = arith.divf %66, %67 : vector<1x128xf32>
    %69 = arith.mulf %60, %43 : vector<1x128xf32>
    %70 = arith.mulf %54, %62 : vector<1x128xf32>
    %71 = arith.addf %69, %70 : vector<1x128xf32>
    %72 = math.tanh %71 : vector<1x128xf32>
    %73 = arith.mulf %68, %72 : vector<1x128xf32>
    %c1 = arith.constant 1 : index
    %c0_22 = arith.constant 0 : index
    %74 = vector.load %arg5[%c1, %c0_22] : memref<8x128xf32, #tpu.memory_space<vmem>>, vector<1x128xf32>
    tpu.vector_store %arg5[%c1, %c0_22], %73 {strides = array<i32>} : memref<8x128xf32, #tpu.memory_space<vmem>>, vector<1x128xf32>,
    %cst_23 = arith.constant dense<0.000000e+00> : vector<1x512xf32>
    %75 = tpu.matmul %73, %16, %cst_23 {dimension_numbers = #tpu.dot_dimension_numbers<[1], [0], [0], [1], [0, 0, 1, 1], [], []>} : vector<1x128xf32>, vector<128x512xf32>, vector<1x512xf32> -> vector<1x512xf32>
    %76 = arith.addf %10, %75 : vector<1x512xf32>
    %77 = vector.extract_strided_slice %76 {offsets = [0, 0], sizes = [1, 128], strides = [1, 1]} : vector<1x512xf32> to vector<1x128xf32>
    %78 = arith.negf %77 : vector<1x128xf32>
    %79 = math.exp %78 : vector<1x128xf32>
    %cst_24 = arith.constant 1.000000e+00 : f32
    %80 = vector.broadcast %cst_24 : f32 to vector<1x128xf32>
    %81 = arith.addf %80, %79 : vector<1x128xf32>
    %82 = arith.divf %80, %81 : vector<1x128xf32>
    %83 = vector.extract_strided_slice %76 {offsets = [0, 128], sizes = [1, 128], strides = [1, 1]} : vector<1x512xf32> to vector<1x128xf32>
    %84 = arith.negf %83 : vector<1x128xf32>
    %85 = math.exp %84 : vector<1x128xf32>
    %cst_25 = arith.constant 1.000000e+00 : f32
    %86 = vector.broadcast %cst_25 : f32 to vector<1x128xf32>
    %87 = arith.addf %86, %85 : vector<1x128xf32>
    %88 = arith.divf %86, %87 : vector<1x128xf32>
    %89 = vector.extract_strided_slice %76 {offsets = [0, 256], sizes = [1, 128], strides = [1, 1]} : vector<1x512xf32> to vector<1x128xf32>
    %90 = math.tanh %89 : vector<1x128xf32>
    %91 = vector.extract_strided_slice %76 {offsets = [0, 384], sizes = [1, 128], strides = [1, 1]} : vector<1x512xf32> to vector<1x128xf32>
    %92 = arith.negf %91 : vector<1x128xf32>
    %93 = math.exp %92 : vector<1x128xf32>
    %cst_26 = arith.constant 1.000000e+00 : f32
    %94 = vector.broadcast %cst_26 : f32 to vector<1x128xf32>
    %95 = arith.addf %94, %93 : vector<1x128xf32>
    %96 = arith.divf %94, %95 : vector<1x128xf32>
    %97 = arith.mulf %88, %71 : vector<1x128xf32>
    %98 = arith.mulf %82, %90 : vector<1x128xf32>
    %99 = arith.addf %97, %98 : vector<1x128xf32>
    %100 = math.tanh %99 : vector<1x128xf32>
    %101 = arith.mulf %96, %100 : vector<1x128xf32>
    %c2 = arith.constant 2 : index
    %c0_27 = arith.constant 0 : index
    %102 = vector.load %arg5[%c2, %c0_27] : memref<8x128xf32, #tpu.memory_space<vmem>>, vector<1x128xf32>
    tpu.vector_store %arg5[%c2, %c0_27], %101 {strides = array<i32>} : memref<8x128xf32, #tpu.memory_space<vmem>>, vector<1x128xf32>,
    %cst_28 = arith.constant dense<0.000000e+00> : vector<1x512xf32>
    %103 = tpu.matmul %101, %16, %cst_28 {dimension_numbers = #tpu.dot_dimension_numbers<[1], [0], [0], [1], [0, 0, 1, 1], [], []>} : vector<1x128xf32>, vector<128x512xf32>, vector<1x512xf32> -> vector<1x512xf32>
    %104 = arith.addf %11, %103 : vector<1x512xf32>
    %105 = vector.extract_strided_slice %104 {offsets = [0, 0], sizes = [1, 128], strides = [1, 1]} : vector<1x512xf32> to vector<1x128xf32>
    %106 = arith.negf %105 : vector<1x128xf32>
    %107 = math.exp %106 : vector<1x128xf32>
    %cst_29 = arith.constant 1.000000e+00 : f32
    %108 = vector.broadcast %cst_29 : f32 to vector<1x128xf32>
    %109 = arith.addf %108, %107 : vector<1x128xf32>
    %110 = arith.divf %108, %109 : vector<1x128xf32>
    %111 = vector.extract_strided_slice %104 {offsets = [0, 128], sizes = [1, 128], strides = [1, 1]} : vector<1x512xf32> to vector<1x128xf32>
    %112 = arith.negf %111 : vector<1x128xf32>
    %113 = math.exp %112 : vector<1x128xf32>
    %cst_30 = arith.constant 1.000000e+00 : f32
    %114 = vector.broadcast %cst_30 : f32 to vector<1x128xf32>
    %115 = arith.addf %114, %113 : vector<1x128xf32>
    %116 = arith.divf %114, %115 : vector<1x128xf32>
    %117 = vector.extract_strided_slice %104 {offsets = [0, 256], sizes = [1, 128], strides = [1, 1]} : vector<1x512xf32> to vector<1x128xf32>
    %118 = math.tanh %117 : vector<1x128xf32>
    %119 = vector.extract_strided_slice %104 {offsets = [0, 384], sizes = [1, 128], strides = [1, 1]} : vector<1x512xf32> to vector<1x128xf32>
    %120 = arith.negf %119 : vector<1x128xf32>
    %121 = math.exp %120 : vector<1x128xf32>
    %cst_31 = arith.constant 1.000000e+00 : f32
    %122 = vector.broadcast %cst_31 : f32 to vector<1x128xf32>
    %123 = arith.addf %122, %121 : vector<1x128xf32>
    %124 = arith.divf %122, %123 : vector<1x128xf32>
    %125 = arith.mulf %116, %99 : vector<1x128xf32>
    %126 = arith.mulf %110, %118 : vector<1x128xf32>
    %127 = arith.addf %125, %126 : vector<1x128xf32>
    %128 = math.tanh %127 : vector<1x128xf32>
    %129 = arith.mulf %124, %128 : vector<1x128xf32>
    %c3 = arith.constant 3 : index
    %c0_32 = arith.constant 0 : index
    %130 = vector.load %arg5[%c3, %c0_32] : memref<8x128xf32, #tpu.memory_space<vmem>>, vector<1x128xf32>
    tpu.vector_store %arg5[%c3, %c0_32], %129 {strides = array<i32>} : memref<8x128xf32, #tpu.memory_space<vmem>>, vector<1x128xf32>,
    %cst_33 = arith.constant dense<0.000000e+00> : vector<1x512xf32>
    %131 = tpu.matmul %129, %16, %cst_33 {dimension_numbers = #tpu.dot_dimension_numbers<[1], [0], [0], [1], [0, 0, 1, 1], [], []>} : vector<1x128xf32>, vector<128x512xf32>, vector<1x512xf32> -> vector<1x512xf32>
    %132 = arith.addf %12, %131 : vector<1x512xf32>
    %133 = vector.extract_strided_slice %132 {offsets = [0, 0], sizes = [1, 128], strides = [1, 1]} : vector<1x512xf32> to vector<1x128xf32>
    %134 = arith.negf %133 : vector<1x128xf32>
    %135 = math.exp %134 : vector<1x128xf32>
    %cst_34 = arith.constant 1.000000e+00 : f32
    %136 = vector.broadcast %cst_34 : f32 to vector<1x128xf32>
    %137 = arith.addf %136, %135 : vector<1x128xf32>
    %138 = arith.divf %136, %137 : vector<1x128xf32>
    %139 = vector.extract_strided_slice %132 {offsets = [0, 128], sizes = [1, 128], strides = [1, 1]} : vector<1x512xf32> to vector<1x128xf32>
    %140 = arith.negf %139 : vector<1x128xf32>
    %141 = math.exp %140 : vector<1x128xf32>
    %cst_35 = arith.constant 1.000000e+00 : f32
    %142 = vector.broadcast %cst_35 : f32 to vector<1x128xf32>
    %143 = arith.addf %142, %141 : vector<1x128xf32>
    %144 = arith.divf %142, %143 : vector<1x128xf32>
    %145 = vector.extract_strided_slice %132 {offsets = [0, 256], sizes = [1, 128], strides = [1, 1]} : vector<1x512xf32> to vector<1x128xf32>
    %146 = math.tanh %145 : vector<1x128xf32>
    %147 = vector.extract_strided_slice %132 {offsets = [0, 384], sizes = [1, 128], strides = [1, 1]} : vector<1x512xf32> to vector<1x128xf32>
    %148 = arith.negf %147 : vector<1x128xf32>
    %149 = math.exp %148 : vector<1x128xf32>
    %cst_36 = arith.constant 1.000000e+00 : f32
    %150 = vector.broadcast %cst_36 : f32 to vector<1x128xf32>
    %151 = arith.addf %150, %149 : vector<1x128xf32>
    %152 = arith.divf %150, %151 : vector<1x128xf32>
    %153 = arith.mulf %144, %127 : vector<1x128xf32>
    %154 = arith.mulf %138, %146 : vector<1x128xf32>
    %155 = arith.addf %153, %154 : vector<1x128xf32>
    %156 = math.tanh %155 : vector<1x128xf32>
    %157 = arith.mulf %152, %156 : vector<1x128xf32>
    %c4 = arith.constant 4 : index
    %c0_37 = arith.constant 0 : index
    %158 = vector.load %arg5[%c4, %c0_37] : memref<8x128xf32, #tpu.memory_space<vmem>>, vector<1x128xf32>
    tpu.vector_store %arg5[%c4, %c0_37], %157 {strides = array<i32>} : memref<8x128xf32, #tpu.memory_space<vmem>>, vector<1x128xf32>,
    %cst_38 = arith.constant dense<0.000000e+00> : vector<1x512xf32>
    %159 = tpu.matmul %157, %16, %cst_38 {dimension_numbers = #tpu.dot_dimension_numbers<[1], [0], [0], [1], [0, 0, 1, 1], [], []>} : vector<1x128xf32>, vector<128x512xf32>, vector<1x512xf32> -> vector<1x512xf32>
    %160 = arith.addf %13, %159 : vector<1x512xf32>
    %161 = vector.extract_strided_slice %160 {offsets = [0, 0], sizes = [1, 128], strides = [1, 1]} : vector<1x512xf32> to vector<1x128xf32>
    %162 = arith.negf %161 : vector<1x128xf32>
    %163 = math.exp %162 : vector<1x128xf32>
    %cst_39 = arith.constant 1.000000e+00 : f32
    %164 = vector.broadcast %cst_39 : f32 to vector<1x128xf32>
    %165 = arith.addf %164, %163 : vector<1x128xf32>
    %166 = arith.divf %164, %165 : vector<1x128xf32>
    %167 = vector.extract_strided_slice %160 {offsets = [0, 128], sizes = [1, 128], strides = [1, 1]} : vector<1x512xf32> to vector<1x128xf32>
    %168 = arith.negf %167 : vector<1x128xf32>
    %169 = math.exp %168 : vector<1x128xf32>
    %cst_40 = arith.constant 1.000000e+00 : f32
    %170 = vector.broadcast %cst_40 : f32 to vector<1x128xf32>
    %171 = arith.addf %170, %169 : vector<1x128xf32>
    %172 = arith.divf %170, %171 : vector<1x128xf32>
    %173 = vector.extract_strided_slice %160 {offsets = [0, 256], sizes = [1, 128], strides = [1, 1]} : vector<1x512xf32> to vector<1x128xf32>
    %174 = math.tanh %173 : vector<1x128xf32>
    %175 = vector.extract_strided_slice %160 {offsets = [0, 384], sizes = [1, 128], strides = [1, 1]} : vector<1x512xf32> to vector<1x128xf32>
    %176 = arith.negf %175 : vector<1x128xf32>
    %177 = math.exp %176 : vector<1x128xf32>
    %cst_41 = arith.constant 1.000000e+00 : f32
    %178 = vector.broadcast %cst_41 : f32 to vector<1x128xf32>
    %179 = arith.addf %178, %177 : vector<1x128xf32>
    %180 = arith.divf %178, %179 : vector<1x128xf32>
    %181 = arith.mulf %172, %155 : vector<1x128xf32>
    %182 = arith.mulf %166, %174 : vector<1x128xf32>
    %183 = arith.addf %181, %182 : vector<1x128xf32>
    %184 = math.tanh %183 : vector<1x128xf32>
    %185 = arith.mulf %180, %184 : vector<1x128xf32>
    %c5 = arith.constant 5 : index
    %c0_42 = arith.constant 0 : index
    %186 = vector.load %arg5[%c5, %c0_42] : memref<8x128xf32, #tpu.memory_space<vmem>>, vector<1x128xf32>
    tpu.vector_store %arg5[%c5, %c0_42], %185 {strides = array<i32>} : memref<8x128xf32, #tpu.memory_space<vmem>>, vector<1x128xf32>,
    %cst_43 = arith.constant dense<0.000000e+00> : vector<1x512xf32>
    %187 = tpu.matmul %185, %16, %cst_43 {dimension_numbers = #tpu.dot_dimension_numbers<[1], [0], [0], [1], [0, 0, 1, 1], [], []>} : vector<1x128xf32>, vector<128x512xf32>, vector<1x512xf32> -> vector<1x512xf32>
    %188 = arith.addf %14, %187 : vector<1x512xf32>
    %189 = vector.extract_strided_slice %188 {offsets = [0, 0], sizes = [1, 128], strides = [1, 1]} : vector<1x512xf32> to vector<1x128xf32>
    %190 = arith.negf %189 : vector<1x128xf32>
    %191 = math.exp %190 : vector<1x128xf32>
    %cst_44 = arith.constant 1.000000e+00 : f32
    %192 = vector.broadcast %cst_44 : f32 to vector<1x128xf32>
    %193 = arith.addf %192, %191 : vector<1x128xf32>
    %194 = arith.divf %192, %193 : vector<1x128xf32>
    %195 = vector.extract_strided_slice %188 {offsets = [0, 128], sizes = [1, 128], strides = [1, 1]} : vector<1x512xf32> to vector<1x128xf32>
    %196 = arith.negf %195 : vector<1x128xf32>
    %197 = math.exp %196 : vector<1x128xf32>
    %cst_45 = arith.constant 1.000000e+00 : f32
    %198 = vector.broadcast %cst_45 : f32 to vector<1x128xf32>
    %199 = arith.addf %198, %197 : vector<1x128xf32>
    %200 = arith.divf %198, %199 : vector<1x128xf32>
    %201 = vector.extract_strided_slice %188 {offsets = [0, 256], sizes = [1, 128], strides = [1, 1]} : vector<1x512xf32> to vector<1x128xf32>
    %202 = math.tanh %201 : vector<1x128xf32>
    %203 = vector.extract_strided_slice %188 {offsets = [0, 384], sizes = [1, 128], strides = [1, 1]} : vector<1x512xf32> to vector<1x128xf32>
    %204 = arith.negf %203 : vector<1x128xf32>
    %205 = math.exp %204 : vector<1x128xf32>
    %cst_46 = arith.constant 1.000000e+00 : f32
    %206 = vector.broadcast %cst_46 : f32 to vector<1x128xf32>
    %207 = arith.addf %206, %205 : vector<1x128xf32>
    %208 = arith.divf %206, %207 : vector<1x128xf32>
    %209 = arith.mulf %200, %183 : vector<1x128xf32>
    %210 = arith.mulf %194, %202 : vector<1x128xf32>
    %211 = arith.addf %209, %210 : vector<1x128xf32>
    %212 = math.tanh %211 : vector<1x128xf32>
    %213 = arith.mulf %208, %212 : vector<1x128xf32>
    %c6 = arith.constant 6 : index
    %c0_47 = arith.constant 0 : index
    %214 = vector.load %arg5[%c6, %c0_47] : memref<8x128xf32, #tpu.memory_space<vmem>>, vector<1x128xf32>
    tpu.vector_store %arg5[%c6, %c0_47], %213 {strides = array<i32>} : memref<8x128xf32, #tpu.memory_space<vmem>>, vector<1x128xf32>,
    %cst_48 = arith.constant dense<0.000000e+00> : vector<1x512xf32>
    %215 = tpu.matmul %213, %16, %cst_48 {dimension_numbers = #tpu.dot_dimension_numbers<[1], [0], [0], [1], [0, 0, 1, 1], [], []>} : vector<1x128xf32>, vector<128x512xf32>, vector<1x512xf32> -> vector<1x512xf32>
    %216 = arith.addf %15, %215 : vector<1x512xf32>
    %217 = vector.extract_strided_slice %216 {offsets = [0, 0], sizes = [1, 128], strides = [1, 1]} : vector<1x512xf32> to vector<1x128xf32>
    %218 = arith.negf %217 : vector<1x128xf32>
    %219 = math.exp %218 : vector<1x128xf32>
    %cst_49 = arith.constant 1.000000e+00 : f32
    %220 = vector.broadcast %cst_49 : f32 to vector<1x128xf32>
    %221 = arith.addf %220, %219 : vector<1x128xf32>
    %222 = arith.divf %220, %221 : vector<1x128xf32>
    %223 = vector.extract_strided_slice %216 {offsets = [0, 128], sizes = [1, 128], strides = [1, 1]} : vector<1x512xf32> to vector<1x128xf32>
    %224 = arith.negf %223 : vector<1x128xf32>
    %225 = math.exp %224 : vector<1x128xf32>
    %cst_50 = arith.constant 1.000000e+00 : f32
    %226 = vector.broadcast %cst_50 : f32 to vector<1x128xf32>
    %227 = arith.addf %226, %225 : vector<1x128xf32>
    %228 = arith.divf %226, %227 : vector<1x128xf32>
    %229 = vector.extract_strided_slice %216 {offsets = [0, 256], sizes = [1, 128], strides = [1, 1]} : vector<1x512xf32> to vector<1x128xf32>
    %230 = math.tanh %229 : vector<1x128xf32>
    %231 = vector.extract_strided_slice %216 {offsets = [0, 384], sizes = [1, 128], strides = [1, 1]} : vector<1x512xf32> to vector<1x128xf32>
    %232 = arith.negf %231 : vector<1x128xf32>
    %233 = math.exp %232 : vector<1x128xf32>
    %cst_51 = arith.constant 1.000000e+00 : f32
    %234 = vector.broadcast %cst_51 : f32 to vector<1x128xf32>
    %235 = arith.addf %234, %233 : vector<1x128xf32>
    %236 = arith.divf %234, %235 : vector<1x128xf32>
    %237 = arith.mulf %228, %211 : vector<1x128xf32>
    %238 = arith.mulf %222, %230 : vector<1x128xf32>
    %239 = arith.addf %237, %238 : vector<1x128xf32>
    %240 = math.tanh %239 : vector<1x128xf32>
    %241 = arith.mulf %236, %240 : vector<1x128xf32>
    %c7 = arith.constant 7 : index
    %c0_52 = arith.constant 0 : index
    %242 = vector.load %arg5[%c7, %c0_52] : memref<8x128xf32, #tpu.memory_space<vmem>>, vector<1x128xf32>
    tpu.vector_store %arg5[%c7, %c0_52], %241 {strides = array<i32>} : memref<8x128xf32, #tpu.memory_space<vmem>>, vector<1x128xf32>,
    return
  }
}

</mosaic_0001>

<bundles_post_ra>
// kernel: tpu_custom_call.1
= control target key start
LH: loop header
LB: loop body
LE: loop exit
PB: predicated region body
PF: predicated region fallthrough
CT: control target
= control target key end

     0   :  { %10 = vsyncpa [#allocation3], 0  ;;  %s3211_s0 = inlined_call_operand.vmem [shape: f32[8,40], index: 0, kind: input, shape index: {}]   ;;  %s3212_s1 = inlined_call_operand.vmem [shape: f32[40,25], index: 1, kind: input, shape index: {}]   ;;  %s3213_s2 = inlined_call_operand.hbm [shape: f32[25,512], index: 2, kind: input, shape index: {}]   ;;  %s3214_s3 = inlined_call_operand.hbm [shape: f32[128,512], index: 3, kind: input, shape index: {}]   ;;  %s3215_s4 = inlined_call_operand.vmem [shape: f32[1,512], index: 4, kind: input, shape index: {}]   ;;  %s3216_s5 = inlined_call_operand.hbm [shape: f32[8,128], index: 5, kind: output, shape index: {}]  }
   0x1   :  { %11 = vsyncpa [#allocation6], 0 }
   0x2   :  { %12 = vsyncpa [#allocation4], 0  ;;  %s2694_s18 = smov [#allocation2]   ;;  %s2622_s22 = scalar_lea.hbm %s3213_s2, 2048 }
   0x3   :  { %s22_s19 = sshll.u32 %s2694_s18, 4  ;;  %p2623_p0 = scmp.ne.s32.totalorder %s3213_s2, %s2622_s22  ;;  %s23_s19 = int_to_ptr.vmem [resolvable:$true] %s22_s19 }
   0x4   :  { %p2626_p1 = scmp.lt.u32.totalorder %s2622_s22, %s3213_s2 }
   0x6   :  { %p2628_p2 = pnand %p2626_p1, %p2623_p0 }
   0x8   :  { %2631 = shalt.err (!%p2628_p2)
}
   0x9   :  { %s2632_s27 = scalar_lea.vmem %s23_s19, 2048  ;;  %p2637_p4 = scmp.lt.s32.totalorder %s23_s19, %s23_s19 }
   0xa   :  { %p2633_p3 = scmp.ne.s32.totalorder %s23_s19, %s2632_s27  ;;  %p2638_p5 = scmp.lt.s32.totalorder %s2632_s27, %s2632_s27 }
   0xc   :  { %p2639_p6 = por %p2638_p5, %p2637_p4 }
   0xe   :  { %p2640_p7 = pnand %p2639_p6, %p2633_p3 }
  0x10   :  { %2643 = shalt.err (!%p2640_p7)
}
  0x11   :  { %s2695_s28 = smov 512   ;;  %s2696_s29 = smov 32  }
  0x12   :  { %28 = dma.hbm_to_vmem [thread:$0]  %s3213_s2, 2048, %s23_s19, [#allocation3], %s2695_s28, %s2695_s28, %s2696_s29  }
  0x13   :  { %s2697_s7 = smov [#allocation5]   ;;  %s2644_s11 = scalar_lea.hbm %s3214_s3, 8192 }
  0x14   :  { %s34_s8 = sshll.u32 %s2697_s7, 4  ;;  %p2645_p8 = scmp.ne.s32.totalorder %s3214_s3, %s2644_s11  ;;  %s35_s8 = int_to_ptr.vmem [resolvable:$true] %s34_s8 }
  0x15   :  { %p2648_p9 = scmp.lt.u32.totalorder %s2644_s11, %s3214_s3 }
  0x17   :  { %p2650_p10 = pnand %p2648_p9, %p2645_p8 }
  0x19   :  { %2653 = shalt.err (!%p2650_p10)
}
  0x1a   :  { %s2654_s16 = scalar_lea.vmem %s35_s8, 8192  ;;  %p2659_p12 = scmp.lt.s32.totalorder %s35_s8, %s35_s8 }
  0x1b   :  { %p2655_p11 = scmp.ne.s32.totalorder %s35_s8, %s2654_s16  ;;  %p2660_p13 = scmp.lt.s32.totalorder %s2654_s16, %s2654_s16 }
  0x1d   :  { %p2661_p0 = por %p2660_p13, %p2659_p12 }
  0x1f   :  { %p2662_p1 = pnand %p2661_p0, %p2655_p11 }
  0x21   :  { %2665 = shalt.err (!%p2662_p1)
}
  0x22   :  { %40 = dma.hbm_to_vmem [thread:$0]  %s3214_s3, 8192, %s35_s8, [#allocation6], %s2695_s28, %s2695_s28, %s2696_s29  }
  0x23   :  { %2688 = dma.done.wait [#allocation3], 2048  }
  0x24   :  { %2689 = vsyncadd [#allocation3], 4294965248 }
  0x25   :  { %2690 = dma.done.wait [#allocation6], 8192  }
  0x26   :  { %2691 = vsyncadd [#allocation6], 4294959104  ;;  %v2698_v0 = vmov 0.0|0.0   ;;  %vm2699_vm0 = vmmov 0   ;;  %v2700_v1 = vmov 0.0   ;;  %v50_v2 = vld [vmem:[%s3212_s1] sm:$0xff] }
  0x27   :  { %1947 = vmatprep.subr.bf16.mxu0 %v2698_v0  ;;  %1944 = vmatprep.mubr.msk.f32.mxu0 %vm2699_vm0, %v2700_v1  ;;  %v51_v3 = vld [vmem:[%s3212_s1 + $0x8] sm:$0xff]  ;;  %v52_v4 = vld [vmem:[%s3212_s1 + $0x10] sm:$0xff]  ;;  %v53_v6 = vld [vmem:[%s3212_s1 + $0x18] sm:$0xff]  ;;  %vm55_vm1 = vcmask 326656   ;;  %vm171_vm2 = vcmask 1040384   ;;  %vm2701_vm3 = vmmov 1  }
  0x28   :  { %248 = vmatprep.mubr.f32.mxu1 %v2700_v1  ;;  %v1948_v5 = vpack.c.bf16 %v51_v3, %v50_v2  ;;  %v1951_v7 = vpack.c.bf16 %v53_v6, %v52_v4  ;;  %v327_v8 = vld [vmem:[#allocation5 + $0x8] sm:$0xff]  ;;  %v326_v10 = vld [vmem:[#allocation5] sm:$0xff]  ;;  %vm2786_vm4 = vmpackc.low %vm171_vm2, %vm2701_vm3  ;;  %vm167_vm5 = vcmask 203776  }
  0x29   :  { %v331_v9 = vld [vmem:[#allocation5 + $0x28] sm:$0xff]  ;;  %v330_v11 = vld [vmem:[#allocation5 + $0x20] sm:$0xff]  ;;  %v136_v6 = vld [vmem:[#allocation2 + $0x38] sm:$0xff] }
  0x2a   :  { %1949 = vmatpush3.bf16.msra.mxu0 %v1948_v5  ;;  %v335_v12 = vld [vmem:[#allocation5 + $0x48] sm:$0xff]  ;;  %v54_v14 = vld [vmem:[%s3212_s1 + $0x20] sm:$0xff]  ;;  %v2775_v15 = vpack.c.bf16 %v331_v9, %v327_v8  ;;  %v2780_v17 = vpack.c.bf16 %v330_v11, %v326_v10  ;;  %v132_v5 = vld [vmem:[#allocation2 + $0x18] sm:$0xff] }
  0x2b   :  { %1950 = vmatprep.subr.bf16.mxu0 %v2698_v0  ;;  %v339_v13 = vld [vmem:[#allocation5 + $0x68] sm:$0xff]  ;;  %v49_v16 = vld [vmem:[%s3211_s0] sm:$0xff]  ;;  %v1963_v8 = vpack.c.bf16 %v136_v6, %v132_v5  ;;  %v131_v11 = vld [vmem:[#allocation2 + $0x10] sm:$0xff] }
  0x2c   :  { %v130_v18 = vld [vmem:[#allocation2 + $0x8] sm:$0xff]  ;;  %v2782_v20 = vpack.c.bf16 %v339_v13, %v335_v12  ;;  %v334_v21 = vld [vmem:[#allocation5 + $0x40] sm:$0xff]  ;;  %v135_v12 = vld [vmem:[#allocation2 + $0x30] sm:$0xff] }
  0x2d   :  { %v134_v19 = vld [vmem:[#allocation2 + $0x28] sm:$0xff]  ;;  %v338_v22 = vld [vmem:[#allocation5 + $0x60] sm:$0xff]  ;;  %v140_v13 = vld [vmem:[#allocation2 + $0x58] sm:$0xff] }
  0x2e   :  { %1952 = vmatpush3.bf16.msra.mxu0 %v1951_v7  ;;  %v1953_v23 = vpack.c.bf16 %v134_v19, %v130_v18  ;;  %v129_v24 = vld [vmem:[#allocation2] sm:$0xff]  ;;  %v343_v25 = vld [vmem:[#allocation5 + $0x88] sm:$0xff]  ;;  %v2791_v32 = vpack.c.bf16 %v338_v22, %v334_v21  ;;  %v139_v19 = vld [vmem:[#allocation2 + $0x50] sm:$0xff] }
  0x2f   :  { %1942 = vmatprep.subr.mxu0 %v2700_v1  ;;  %v347_v26 = vld [vmem:[#allocation5 + $0xa8] sm:$0xff]  ;;  %v133_v27 = vld [vmem:[#allocation2 + $0x20] sm:$0xff]  ;;  %v143_v21 = vld [vmem:[#allocation2 + $0x70] sm:$0x1] }
  0x30   :  { %v1955_v28 = vpack.c.bf16 %v133_v27, %v129_v24  ;;  %v138_v29 = vld [vmem:[#allocation2 + $0x48] sm:$0xff]  ;;  %1954 = vmatprep.subr.bf16.mxu1 %v1953_v23  ;;  %v137_v34 = vld [vmem:[#allocation2 + $0x40] sm:$0xff]  ;;  %v2794_v36 = vpack.c.bf16 %v347_v26, %v343_v25  ;;  %v329_v23 = vld [vmem:[#allocation5 + $0x18] sm:$0xff]  ;;  %v1970_v26 = vpack.c.bf16 %v143_v21, %v139_v19 }
  0x31   :  { %v142_v30 = vld [vmem:[#allocation2 + $0x68] sm:$0x1]  ;;  %v141_v35 = vld [vmem:[#allocation2 + $0x60] sm:$0x1]  ;;  %v333_v24 = vld [vmem:[#allocation5 + $0x38] sm:$0xff] }
  0x32   :  { %1943 = vmatpush3.msra.mxu0 %v54_v14  ;;  %v1957_v33 = vpack.c.bf16 %v142_v30, %v138_v29  ;;  %v342_v37 = vld [vmem:[#allocation5 + $0x80] sm:$0xff]  ;;  %1956 = vmatpush1.bf16.msra.mxu1 %v1955_v28  ;;  %v1960_v39 = vpack.c.bf16 %v141_v35, %v137_v34  ;;  %v351_v40 = vld [vmem:[#allocation5 + $0xc8] sm:$0xff]  ;;  %v144_v14 = vld [vmem:[#allocation2 + $0x78] sm:$0x1]  ;;  %v2859_v27 = vpack.c.bf16 %v333_v24, %v329_v23 }
  0x33   :  { %1945 = vmatmul.mubr.msk.f32.vlgmr.msra.gmra.mrb[0].mxu0 %vm55_vm1, %v49_v16  ;;  %1974 = vmatprep.subr.bf16.mxu0 %v2775_v15  ;;  %v346_v38 = vld [vmem:[#allocation5 + $0xa0] sm:$0xff]  ;;  %v355_v41 = vld [vmem:[#allocation5 + $0xe8] sm:$0xff]  ;;  %v1965_v16 = vpack.c.bf16 %v135_v12, %v131_v11  ;;  %v1967_v18 = vpack.c.bf16 %v144_v14, %v140_v13  ;;  %v328_v28 = vld [vmem:[#allocation5 + $0x10] sm:$0xff] }
  0x34   :  { %1976 = vmatpush1.bf16.msra.mxu0 %v2780_v17  ;;  %1959 = vmatprep.subr.msk.bf16.mxu1 %vm2786_vm4, %v1957_v33  ;;  %v2800_v42 = vpack.c.bf16 %v346_v38, %v342_v37  ;;  %v2803_v43 = vpack.c.bf16 %v355_v41, %v351_v40  ;;  %v350_v44 = vld [vmem:[#allocation5 + $0xc0] sm:$0xff]  ;;  %v359_v46 = vld [vmem:[#allocation5 + $0x108] sm:$0xff]  ;;  %v332_v29 = vld [vmem:[#allocation5 + $0x30] sm:$0xff] }
  0x35   :  { %1978 = vmatprep.subr.bf16.mxu0 %v2782_v20  ;;  %454 = vmatprep.mubr.f32.mxu0 %v2700_v1  ;;  %v354_v45 = vld [vmem:[#allocation5 + $0xe0] sm:$0xff]  ;;  %v363_v47 = vld [vmem:[#allocation5 + $0x128] sm:$0xff]  ;;  %v337_v30 = vld [vmem:[#allocation5 + $0x58] sm:$0xff]  ;;  %v2863_v34 = vpack.c.bf16 %v332_v29, %v328_v28  ;;  %v147_v29 = vlaneseq }
  0x36   :  { %1962 = vmatpush1.bf16.msk.msra.mxu1 %vm2786_vm4, %v1960_v39  ;;  %v2808_v48 = vpack.c.bf16 %v354_v45, %v350_v44  ;;  %v2811_v49 = vpack.c.bf16 %v363_v47, %v359_v46  ;;  %v358_v50 = vld [vmem:[#allocation5 + $0x100] sm:$0xff]  ;;  %v367_v52 = vld [vmem:[#allocation5 + $0x148] sm:$0xff]  ;;  %v341_v33 = vld [vmem:[#allocation5 + $0x78] sm:$0xff] }
  0x37   :  { %v362_v51 = vld [vmem:[#allocation5 + $0x120] sm:$0xff]  ;;  %v371_v53 = vld [vmem:[#allocation5 + $0x168] sm:$0xff]  ;;  %1964 = vmatprep.subr.bf16.mxu1 %v1963_v8  ;;  %v2866_v35 = vpack.c.bf16 %v341_v33, %v337_v30  ;;  %v336_v37 = vld [vmem:[#allocation5 + $0x50] sm:$0xff]  ;;  %v148_v30 = vshrl.u32 %v147_v29, 7 }
  0x38   :  { %1980 = vmatpush1.bf16.msra.mxu0 %v2791_v32  ;;  %v2814_v54 = vpack.c.bf16 %v362_v51, %v358_v50  ;;  %v2817_v55 = vpack.c.bf16 %v371_v53, %v367_v52  ;;  %v366_v56 = vld [vmem:[#allocation5 + $0x140] sm:$0xff]  ;;  %v375_v58 = vld [vmem:[#allocation5 + $0x188] sm:$0xff]  ;;  %v340_v38 = vld [vmem:[#allocation5 + $0x70] sm:$0xff] }
  0x39   :  { %1982 = vmatprep.subr.bf16.mxu0 %v2794_v36  ;;  %v370_v57 = vld [vmem:[#allocation5 + $0x160] sm:$0xff]  ;;  %v379_v59 = vld [vmem:[#allocation5 + $0x1a8] sm:$0xff]  ;;  %v345_v39 = vld [vmem:[#allocation5 + $0x98] sm:$0xff]  ;;  %v2870_v41 = vpack.c.bf16 %v340_v38, %v336_v37  ;;  %v153_v38 = vsub.s32 1, %v148_v30 }
  0x3a   :  { %v2820_v60 = vpack.c.bf16 %v370_v57, %v366_v56  ;;  %v2823_v61 = vpack.c.bf16 %v379_v59, %v375_v58  ;;  %v374_v62 = vld [vmem:[#allocation5 + $0x180] sm:$0xff]  ;;  %v383_v0 = vld [vmem:[#allocation5 + $0x1c8] sm:$0xff]  ;;  %v349_v40 = vld [vmem:[#allocation5 + $0xb8] sm:$0xff] }
  0x3b   :  { %v378_v63 = vld [vmem:[#allocation5 + $0x1a0] sm:$0xff]  ;;  %v387_v2 = vld [vmem:[#allocation5 + $0x1e8] sm:$0xff]  ;;  %v2874_v31 = vpack.c.bf16 %v349_v40, %v345_v39  ;;  %v344_v44 = vld [vmem:[#allocation5 + $0x90] sm:$0xff]  ;;  %v149_v40 = vsub.s32 0, %v148_v30 }
  0x3c   :  { %1984 = vmatpush1.bf16.msra.mxu0 %v2800_v42  ;;  %v2826_v3 = vpack.c.bf16 %v378_v63, %v374_v62  ;;  %v2829_v4 = vpack.c.bf16 %v387_v2, %v383_v0  ;;  %v382_v7 = vld [vmem:[#allocation5 + $0x1c0] sm:$0xff]  ;;  %v348_v45 = vld [vmem:[#allocation5 + $0xb0] sm:$0xff]  ;;  %v353_v46 = vld [vmem:[#allocation5 + $0xd8] sm:$0xff] }
  0x3d   :  { %1986 = vmatprep.subr.bf16.mxu0 %v2803_v43  ;;  %v386_v9 = vld [vmem:[#allocation5 + $0x1e0] sm:$0xff]  ;;  %v357_v47 = vld [vmem:[#allocation5 + $0xf8] sm:$0xff]  ;;  %v2877_v50 = vpack.c.bf16 %v348_v45, %v344_v44  ;;  %v352_v52 = vld [vmem:[#allocation5 + $0xd0] sm:$0xff] }
  0x3e   :  { %v2833_v10 = vpack.c.bf16 %v386_v9, %v382_v7  ;;  %v2880_v51 = vpack.c.bf16 %v357_v47, %v353_v46  ;;  %v356_v53 = vld [vmem:[#allocation5 + $0xf0] sm:$0xff]  ;;  %v361_v56 = vld [vmem:[#allocation5 + $0x118] sm:$0xff]  ;;  %v145_v39 = vld [vmem:[%s3215_s4] sm:$0xf]  ;;  %s2702_s4 = smov [#allocation7]  }
  0x3f   :  { %v365_v57 = vld [vmem:[#allocation5 + $0x138] sm:$0xff]  ;;  %v2883_v58 = vpack.c.bf16 %v356_v53, %v352_v52  ;;  %v360_v62 = vld [vmem:[#allocation5 + $0x110] sm:$0xff]  ;;  %v154_v44 = vrot.slane %v145_v39, %v153_v38  ;;  %v150_v46 = vrot.slane %v145_v39, %v149_v40  ;;  %s1887_s29 = sshll.u32 %s2702_s4, 4  ;;  %s1888_s29 = int_to_ptr.vmem [resolvable:$true] %s1887_s29 }
  0x40   :  { %1988 = vmatpush1.bf16.msra.mxu0 %v2808_v48  ;;  %v2886_v59 = vpack.c.bf16 %v365_v57, %v361_v56  ;;  %v364_v63 = vld [vmem:[#allocation5 + $0x130] sm:$0xff]  ;;  %v369_v0 = vld [vmem:[#allocation5 + $0x158] sm:$0xff]  ;;  %s2666_s30 = scalar_lea.vmem %s1888_s29, 128  ;;  %p2671_p3 = scmp.lt.s32.totalorder %s1888_s29, %s1888_s29 }
  0x41   :  { %1990 = vmatprep.subr.bf16.mxu0 %v2811_v49  ;;  %v373_v2 = vld [vmem:[#allocation5 + $0x178] sm:$0xff]  ;;  %v2889_v5 = vpack.c.bf16 %v364_v63, %v360_v62  ;;  %v368_v7 = vld [vmem:[#allocation5 + $0x150] sm:$0xff]  ;;  %p2667_p2 = scmp.ne.s32.totalorder %s1888_s29, %s2666_s30  ;;  %p2672_p4 = scmp.lt.s32.totalorder %s2666_s30, %s2666_s30 }
  0x42   :  { %v2892_v6 = vpack.c.bf16 %v373_v2, %v369_v0  ;;  %v372_v8 = vld [vmem:[#allocation5 + $0x170] sm:$0xff]  ;;  %v377_v9 = vld [vmem:[#allocation5 + $0x198] sm:$0xff]  ;;  %v157_v0 = vsub.s32 2, %v148_v30  ;;  %v161_v2 = vsub.s32 3, %v148_v30 }
  0x43   :  { %v381_v11 = vld [vmem:[#allocation5 + $0x1b8] sm:$0xff]  ;;  %v2895_v12 = vpack.c.bf16 %v372_v8, %v368_v7  ;;  %v376_v14 = vld [vmem:[#allocation5 + $0x190] sm:$0xff]  ;;  %p2673_p5 = por %p2672_p4, %p2671_p3 }
  0x44   :  { %1992 = vmatpush1.bf16.msra.mxu0 %v2814_v54  ;;  %v2898_v13 = vpack.c.bf16 %v381_v11, %v377_v9  ;;  %v389_v19 = vld [vmem:[#allocation5 + $0x1f8] sm:$0xff]  ;;  %v384_v23 = vld [vmem:[#allocation5 + $0x1d0] sm:$0xff]  ;;  %v158_v9 = vrot.slane %v145_v39, %v157_v0  ;;  %v162_v11 = vrot.slane %v145_v39, %v161_v2 }
  0x45   :  { %1994 = vmatprep.subr.bf16.mxu0 %v2817_v55  ;;  %v388_v24 = vld [vmem:[#allocation5 + $0x1f0] sm:$0xff]  ;;  %p2674_p6 = pnand %p2673_p5, %p2667_p2 }
  0x48   :  { %1996 = vmatpush1.bf16.msra.mxu0 %v2820_v60 }
  0x49   :  { %1998 = vmatprep.subr.bf16.mxu0 %v2823_v61 }
  0x4c   :  { %2000 = vmatpush1.bf16.msra.mxu0 %v2826_v3 }
  0x4d   :  { %2002 = vmatprep.subr.bf16.mxu0 %v2829_v4 }
  0x50   :  { %2004 = vmatpush1.bf16.msra.mxu0 %v2833_v10 }
  0x51   :  { %2038 = vmatprep.subr.bf16.mxu0 %v2775_v15 }
  0x53   :  { %455 = vmatmul.mubr.f32.vlgmr.msra.gmra.mrb[2].mxu0 %v2700_v1 }
  0x54   :  { %2040 = vmatpush1.bf16.msra.mxu0 %v2780_v17  ;;  %625 = vmatprep.mubr.f32.mxu0 %v2700_v1 }
  0x55   :  { %2042 = vmatprep.subr.bf16.mxu0 %v2782_v20 }
  0x58   :  { %2044 = vmatpush1.bf16.msra.mxu0 %v2791_v32 }
  0x59   :  { %2046 = vmatprep.subr.bf16.mxu0 %v2794_v36 }
  0x5c   :  { %2048 = vmatpush1.bf16.msra.mxu0 %v2800_v42 }
  0x5d   :  { %2050 = vmatprep.subr.bf16.mxu0 %v2803_v43 }
  0x60   :  { %2052 = vmatpush1.bf16.msra.mxu0 %v2808_v48 }
  0x61   :  { %2054 = vmatprep.subr.bf16.mxu0 %v2811_v49 }
  0x64   :  { %2056 = vmatpush1.bf16.msra.mxu0 %v2814_v54 }
  0x65   :  { %2058 = vmatprep.subr.bf16.mxu0 %v2817_v55 }
  0x68   :  { %2060 = vmatpush1.bf16.msra.mxu0 %v2820_v60 }
  0x69   :  { %2062 = vmatprep.subr.bf16.mxu0 %v2823_v61 }
  0x6c   :  { %2064 = vmatpush1.bf16.msra.mxu0 %v2826_v3 }
  0x6d   :  { %2066 = vmatprep.subr.bf16.mxu0 %v2829_v4 }
  0x70   :  { %2068 = vmatpush1.bf16.msra.mxu0 %v2833_v10 }
  0x71   :  { %2102 = vmatprep.subr.bf16.mxu0 %v2775_v15 }
 0x106   :  { %v125_v22 = vpop.f32.mrb[0].mxu0 }
 0x107   :  { %v1946_v25 = vpop.f32.mrb[1].mxu0  ;;  %1900 = vmatmul.mubr.msk.f32.vlgmr.msra.gmra.mrb[0].mxu1 %vm167_vm5, %v125_v22 }
 0x108   :  { %1966 = vmatpush1.bf16.msra.mxu1 %v1965_v16  ;;  %319 = vmatprep.mubr.f32.mxu1 %v2700_v1  ;;  %v380_v16 = vld [vmem:[#allocation5 + $0x1b0] sm:$0xff]  ;;  %v2907_v25 = vpack.c.bf16 %v388_v24, %v384_v23 }
 0x109   :  { %1969 = vmatprep.subr.msk.bf16.mxu1 %vm2786_vm4, %v1967_v18  ;;  %v385_v18 = vld [vmem:[#allocation5 + $0x1d8] sm:$0xff]  ;;  %v2901_v21 = vpack.c.bf16 %v380_v16, %v376_v14 }
 0x10c   :  { %1972 = vmatpush1.bf16.msk.msra.mxu1 %vm2786_vm4, %v1970_v26 }
 0x10d   :  { %2006 = vmatprep.subr.bf16.mxu1 %v2859_v27 }
 0x10f   :  { %1903 = vmatmul.mubr.msk.f32.vlgmr.msra.gmra.mrb[2].mxu1 %vm167_vm5, %v125_v22  ;;  %v2904_v22 = vpack.c.bf16 %v389_v19, %v385_v18 }
 0x110   :  { %2008 = vmatpush1.bf16.msra.mxu1 %v2863_v34  ;;  %525 = vmatprep.mubr.f32.mxu1 %v2700_v1 }
 0x111   :  { %2010 = vmatprep.subr.bf16.mxu1 %v2866_v35 }
 0x114   :  { %2012 = vmatpush1.bf16.msra.mxu1 %v2870_v41 }
 0x115   :  { %2014 = vmatprep.subr.bf16.mxu1 %v2874_v31 }
 0x118   :  { %2016 = vmatpush1.bf16.msra.mxu1 %v2877_v50 }
 0x119   :  { %2018 = vmatprep.subr.bf16.mxu1 %v2880_v51 }
 0x11c   :  { %2020 = vmatpush1.bf16.msra.mxu1 %v2883_v58 }
 0x11d   :  { %2022 = vmatprep.subr.bf16.mxu1 %v2886_v59 }
 0x120   :  { %2024 = vmatpush1.bf16.msra.mxu1 %v2889_v5 }
 0x121   :  { %2026 = vmatprep.subr.bf16.mxu1 %v2892_v6 }
 0x124   :  { %2028 = vmatpush1.bf16.msra.mxu1 %v2895_v12 }
 0x125   :  { %2030 = vmatprep.subr.bf16.mxu1 %v2898_v13 }
 0x126   :  { %v456_v26 = vpop.f32.mrb[2].mxu0 }
 0x127   :  { %v458_v28 = vpop.f32.mrb[3].mxu0 }
 0x128   :  { %2032 = vmatpush1.bf16.msra.mxu1 %v2901_v21 }
 0x129   :  { %2034 = vmatprep.subr.bf16.mxu1 %v2904_v22 }
 0x12c   :  { %2036 = vmatpush1.bf16.msra.mxu1 %v2907_v25 }
 0x12d   :  { %2070 = vmatprep.subr.bf16.mxu1 %v2859_v27 }
 0x12f   :  { %526 = vmatmul.mubr.f32.vlgmr.msra.gmra.mrb[4].mxu1 %v2700_v1 }
 0x130   :  { %2072 = vmatpush1.bf16.msra.mxu1 %v2863_v34  ;;  %696 = vmatprep.mubr.f32.mxu1 %v2700_v1 }
 0x131   :  { %2074 = vmatprep.subr.bf16.mxu1 %v2866_v35 }
 0x134   :  { %2076 = vmatpush1.bf16.msra.mxu1 %v2870_v41 }
 0x135   :  { %2078 = vmatprep.subr.bf16.mxu1 %v2874_v31 }
 0x138   :  { %2080 = vmatpush1.bf16.msra.mxu1 %v2877_v50 }
 0x139   :  { %2082 = vmatprep.subr.bf16.mxu1 %v2880_v51 }
 0x13c   :  { %2084 = vmatpush1.bf16.msra.mxu1 %v2883_v58 }
 0x13d   :  { %2086 = vmatprep.subr.bf16.mxu1 %v2886_v59 }
 0x140   :  { %2088 = vmatpush1.bf16.msra.mxu1 %v2889_v5 }
 0x141   :  { %2090 = vmatprep.subr.bf16.mxu1 %v2892_v6 }
 0x144   :  { %2092 = vmatpush1.bf16.msra.mxu1 %v2895_v12 }
 0x145   :  { %2094 = vmatprep.subr.bf16.mxu1 %v2898_v13 }
 0x148   :  { %2096 = vmatpush1.bf16.msra.mxu1 %v2901_v21 }
 0x149   :  { %2098 = vmatprep.subr.bf16.mxu1 %v2904_v22 }
 0x14c   :  { %2100 = vmatpush1.bf16.msra.mxu1 %v2907_v25 }
 0x14d   :  { %2134 = vmatprep.subr.bf16.mxu1 %v2859_v27 }
 0x1da   :  { %v250_v33 = vpop.f32.mrb[0].mxu1 }
 0x1db   :  { %v252_v37 = vpop.f32.mrb[1].mxu1  ;;  %v2935_v53 = vadd.f32 %v250_v33, %v150_v46 }
 0x1dc   :  { %v2933_v52 = vadd.f32 %v252_v37, %v154_v44 }
 0x1dd   :  { %v532_v57 = vadd.f32 %v456_v26, %v2935_v53 }
 0x1de   :  { %v533_v56 = vadd.f32 %v458_v28, %v2933_v52 }
 0x1df   :  { %v1904_v63 = vmul.f32 -1.442695, %v532_v57 }
 0x1e0   :  { %v1905_v62 = vmul.f32 -1.442695, %v533_v56 }
 0x1e2   :  { %v321_v45 = vpop.f32.mrb[2].mxu1  ;;  %2494 = vpow2.f32 %v1905_v62 }
 0x1e3   :  { %v323_v47 = vpop.f32.mrb[3].mxu1  ;;  %2496 = vpow2.f32 %v1904_v63  ;;  %v2939_v18 = vadd.f32 %v321_v45, %v158_v9 }
 0x1e4   :  { %v2941_v19 = vadd.f32 %v323_v47, %v162_v11 }
 0x1ec   :  { %v2495_v7 = vpop.eup %2494 }
 0x1ed   :  { %v2497_v8 = vpop.eup %2496  ;;  %v545_v14 = vadd.f32 1.0, %v2495_v7 }
 0x1ee   :  { %v539_v16 = vadd.f32 1.0, %v2497_v8 }
 0x1ef   :  { %2498 = vrcp.f32 %v545_v14 }
 0x1f0   :  { %2500 = vrcp.f32 %v539_v16 }
 0x1f9   :  { %v2499_v30 = vpop.eup %2498 }
 0x1fa   :  { %v2501_v33 = vpop.eup %2500  ;;  %v555_v38 = vmul.f32 0.0, %v2499_v30 }
 0x202   :  { %v527_v23 = vpop.f32.mrb[4].mxu1 }
 0x203   :  { %v534_v24 = vadd.f32 %v527_v23, %v2939_v18  ;;  %v529_v26 = vpop.f32.mrb[5].mxu1 }
 0x204   :  { %v535_v28 = vadd.f32 %v529_v26, %v2941_v19 }
 0x205   :  { %2502 = vtanh.f32 %v534_v24 }
 0x206   :  { %v1906_v29 = vmul.f32 -1.442695, %v535_v28 }
 0x208   :  { %2504 = vpow2.f32 %v1906_v29 }
 0x20f   :  { %v2503_v37 = vpop.eup %2502 }
 0x210   :  { %v556_v39 = vmul.f32 %v2503_v37, %v2501_v33 }
 0x212   :  { %v2505_v40 = vpop.eup %2504  ;;  %v2945_v44 = vadd.f32 %v556_v39, %v555_v38 }
 0x213   :  { %v552_v45 = vadd.f32 1.0, %v2505_v40 }
 0x214   :  { %2506 = vtanh.f32 %v2945_v44 }
 0x215   :  { %2508 = vrcp.f32 %v552_v45  ;;  %v739_v45 = vrot.slane %v2945_v44, 7 }
 0x21e   :  { %v2507_v46 = vpop.eup %2506 }
 0x21f   :  { %v2509_v47 = vpop.eup %2508 }
 0x220   :  { %v559_v56 = vmul.f32 %v2509_v47, %v2507_v46 }
 0x222   :  { %560 = vst [vmem:[#allocation7] sm:$0x1] %v559_v56  ;;  %626 = vmatmul.mubr.f32.vlgmr.msra.gmra.mrb[4].mxu0 %v559_v56  ;;  %697 = vmatmul.mubr.f32.vlgmr.msra.gmra.mrb[6].mxu1 %v559_v56 }
 0x223   :  { %2104 = vmatpush1.bf16.msra.mxu0 %v2780_v17  ;;  %2136 = vmatpush1.bf16.msra.mxu1 %v2863_v34 }
 0x224   :  { %2106 = vmatprep.subr.bf16.mxu0 %v2782_v20  ;;  %2138 = vmatprep.subr.bf16.mxu1 %v2866_v35 }
 0x225   :  { %814 = vmatprep.mubr.f32.mxu0 %v2700_v1  ;;  %885 = vmatprep.mubr.f32.mxu1 %v2700_v1 }
 0x227   :  { %2108 = vmatpush1.bf16.msra.mxu0 %v2791_v32  ;;  %2140 = vmatpush1.bf16.msra.mxu1 %v2870_v41 }
 0x228   :  { %2110 = vmatprep.subr.bf16.mxu0 %v2794_v36  ;;  %2142 = vmatprep.subr.bf16.mxu1 %v2874_v31 }
 0x22b   :  { %2112 = vmatpush1.bf16.msra.mxu0 %v2800_v42  ;;  %2144 = vmatpush1.bf16.msra.mxu1 %v2877_v50 }
 0x22c   :  { %2114 = vmatprep.subr.bf16.mxu0 %v2803_v43  ;;  %2146 = vmatprep.subr.bf16.mxu1 %v2880_v51 }
 0x22f   :  { %2116 = vmatpush1.bf16.msra.mxu0 %v2808_v48  ;;  %2148 = vmatpush1.bf16.msra.mxu1 %v2883_v58 }
 0x230   :  { %2118 = vmatprep.subr.bf16.mxu0 %v2811_v49  ;;  %2150 = vmatprep.subr.bf16.mxu1 %v2886_v59 }
 0x233   :  { %2120 = vmatpush1.bf16.msra.mxu0 %v2814_v54  ;;  %2152 = vmatpush1.bf16.msra.mxu1 %v2889_v5 }
 0x234   :  { %2122 = vmatprep.subr.bf16.mxu0 %v2817_v55  ;;  %2154 = vmatprep.subr.bf16.mxu1 %v2892_v6 }
 0x237   :  { %2124 = vmatpush1.bf16.msra.mxu0 %v2820_v60  ;;  %2156 = vmatpush1.bf16.msra.mxu1 %v2895_v12 }
 0x238   :  { %2126 = vmatprep.subr.bf16.mxu0 %v2823_v61  ;;  %2158 = vmatprep.subr.bf16.mxu1 %v2898_v13 }
 0x23b   :  { %2128 = vmatpush1.bf16.msra.mxu0 %v2826_v3  ;;  %2160 = vmatpush1.bf16.msra.mxu1 %v2901_v21 }
 0x23c   :  { %2130 = vmatprep.subr.bf16.mxu0 %v2829_v4  ;;  %2162 = vmatprep.subr.bf16.mxu1 %v2904_v22 }
 0x23f   :  { %2132 = vmatpush1.bf16.msra.mxu0 %v2833_v10  ;;  %2164 = vmatpush1.bf16.msra.mxu1 %v2907_v25 }
 0x240   :  { %2166 = vmatprep.subr.bf16.mxu0 %v2775_v15  ;;  %2198 = vmatprep.subr.bf16.mxu1 %v2859_v27 }
 0x2f5   :  { %v627_v57 = vpop.f32.mrb[4].mxu0  ;;  %v698_v62 = vpop.f32.mrb[6].mxu1 }
 0x2f6   :  { %v707_v63 = vrot.slane %v627_v57, 7  ;;  %v629_v0 = vpop.f32.mrb[5].mxu0  ;;  %v700_v2 = vpop.f32.mrb[7].mxu1  ;;  %v709_v24 = vrot.slane %v698_v62, 7 }
 0x2f7   :  { %v708_v7 = vrot.slane %v629_v0, 7  ;;  %v710_v16 = vrot.slane %v700_v2, 7 }
 0x2f8   :  { %v715_v8 = vadd.f32 %v707_v63, %v2935_v53  ;;  %v717_v28 = vadd.f32 %v709_v24, %v2939_v18 }
 0x2f9   :  { %v716_v9 = vadd.f32 %v708_v7, %v2933_v52  ;;  %v718_v23 = vadd.f32 %v710_v16, %v2941_v19 }
 0x2fa   :  { %v1907_v11 = vmul.f32 -1.442695, %v715_v8 }
 0x2fb   :  { %v1908_v14 = vmul.f32 -1.442695, %v716_v9  ;;  %v1909_v26 = vmul.f32 -1.442695, %v718_v23 }
 0x2fc   :  { %2510 = vpow2.f32 %v1907_v11 }
 0x2fd   :  { %2512 = vpow2.f32 %v1908_v14 }
 0x2fe   :  { %2514 = vpow2.f32 %v1909_v26 }
 0x2ff   :  { %2516 = vtanh.f32 %v717_v28 }
 0x306   :  { %v2511_v29 = vpop.eup %2510 }
 0x307   :  { %v2513_v30 = vpop.eup %2512  ;;  %v722_v33 = vadd.f32 1.0, %v2511_v29 }
 0x308   :  { %v728_v37 = vadd.f32 1.0, %v2513_v30  ;;  %v2515_v38 = vpop.eup %2514 }
 0x309   :  { %2518 = vrcp.f32 %v722_v33  ;;  %v2517_v39 = vpop.eup %2516  ;;  %v735_v56 = vadd.f32 1.0, %v2515_v38 }
 0x30a   :  { %2520 = vrcp.f32 %v728_v37 }
 0x30b   :  { %2522 = vrcp.f32 %v735_v56 }
 0x313   :  { %v2519_v40 = vpop.eup %2518 }
 0x314   :  { %v2521_v46 = vpop.eup %2520  ;;  %v742_v47 = vmul.f32 %v2519_v40, %v2517_v39 }
 0x315   :  { %v741_v57 = vmul.f32 %v2521_v46, %v739_v45  ;;  %v2523_v63 = vpop.eup %2522 }
 0x317   :  { %v2987_v62 = vadd.f32 %v742_v47, %v741_v57 }
 0x319   :  { %2524 = vtanh.f32 %v2987_v62 }
 0x323   :  { %v2525_v0 = vpop.eup %2524 }
 0x324   :  { %v745_v2 = vmul.f32 %v2525_v0, %v2523_v63  ;;  %v928_v63 = vrot.slane %v2987_v62, 7 }
 0x326   :  { %746 = vst [vmem:[#allocation7] sm:$0x2] %v745_v2  ;;  %v748_v7 = vrot.slane %v745_v2, 1 }
 0x328   :  { %815 = vmatmul.mubr.f32.vlgmr.msra.gmra.mrb[6].mxu0 %v748_v7  ;;  %886 = vmatmul.mubr.f32.vlgmr.msra.gmra.mrb[8].mxu1 %v748_v7 }
 0x329   :  { %2168 = vmatpush1.bf16.msra.mxu0 %v2780_v17  ;;  %2200 = vmatpush1.bf16.msra.mxu1 %v2863_v34 }
 0x32a   :  { %2170 = vmatprep.subr.bf16.mxu0 %v2782_v20  ;;  %2202 = vmatprep.subr.bf16.mxu1 %v2866_v35 }
 0x32b   :  { %1003 = vmatprep.mubr.f32.mxu0 %v2700_v1  ;;  %1074 = vmatprep.mubr.f32.mxu1 %v2700_v1 }
 0x32d   :  { %2172 = vmatpush1.bf16.msra.mxu0 %v2791_v32  ;;  %2204 = vmatpush1.bf16.msra.mxu1 %v2870_v41 }
 0x32e   :  { %2174 = vmatprep.subr.bf16.mxu0 %v2794_v36  ;;  %2206 = vmatprep.subr.bf16.mxu1 %v2874_v31 }
 0x331   :  { %2176 = vmatpush1.bf16.msra.mxu0 %v2800_v42  ;;  %2208 = vmatpush1.bf16.msra.mxu1 %v2877_v50 }
 0x332   :  { %2178 = vmatprep.subr.bf16.mxu0 %v2803_v43  ;;  %2210 = vmatprep.subr.bf16.mxu1 %v2880_v51 }
 0x335   :  { %2180 = vmatpush1.bf16.msra.mxu0 %v2808_v48  ;;  %2212 = vmatpush1.bf16.msra.mxu1 %v2883_v58 }
 0x336   :  { %2182 = vmatprep.subr.bf16.mxu0 %v2811_v49  ;;  %2214 = vmatprep.subr.bf16.mxu1 %v2886_v59 }
 0x339   :  { %2184 = vmatpush1.bf16.msra.mxu0 %v2814_v54  ;;  %2216 = vmatpush1.bf16.msra.mxu1 %v2889_v5 }
 0x33a   :  { %2186 = vmatprep.subr.bf16.mxu0 %v2817_v55  ;;  %2218 = vmatprep.subr.bf16.mxu1 %v2892_v6 }
 0x33d   :  { %2188 = vmatpush1.bf16.msra.mxu0 %v2820_v60  ;;  %2220 = vmatpush1.bf16.msra.mxu1 %v2895_v12 }
 0x33e   :  { %2190 = vmatprep.subr.bf16.mxu0 %v2823_v61  ;;  %2222 = vmatprep.subr.bf16.mxu1 %v2898_v13 }
 0x341   :  { %2192 = vmatpush1.bf16.msra.mxu0 %v2826_v3  ;;  %2224 = vmatpush1.bf16.msra.mxu1 %v2901_v21 }
 0x342   :  { %2194 = vmatprep.subr.bf16.mxu0 %v2829_v4  ;;  %2226 = vmatprep.subr.bf16.mxu1 %v2904_v22 }
 0x345   :  { %2196 = vmatpush1.bf16.msra.mxu0 %v2833_v10  ;;  %2228 = vmatpush1.bf16.msra.mxu1 %v2907_v25 }
 0x346   :  { %2230 = vmatprep.subr.bf16.mxu0 %v2775_v15  ;;  %2262 = vmatprep.subr.bf16.mxu1 %v2859_v27 }
 0x3fb   :  { %v816_v44 = vpop.f32.mrb[6].mxu0  ;;  %v887_v8 = vpop.f32.mrb[8].mxu1 }
 0x3fc   :  { %v896_v9 = vrot.slane %v816_v44, 6  ;;  %v818_v11 = vpop.f32.mrb[7].mxu0  ;;  %v889_v14 = vpop.f32.mrb[9].mxu1  ;;  %v898_v33 = vrot.slane %v887_v8, 6 }
 0x3fd   :  { %v897_v16 = vrot.slane %v818_v11, 6  ;;  %v899_v29 = vrot.slane %v889_v14, 6 }
 0x3fe   :  { %v904_v23 = vadd.f32 %v896_v9, %v2935_v53  ;;  %v906_v38 = vadd.f32 %v898_v33, %v2939_v18 }
 0x3ff   :  { %v905_v24 = vadd.f32 %v897_v16, %v2933_v52  ;;  %v907_v30 = vadd.f32 %v899_v29, %v2941_v19 }
 0x400   :  { %v1910_v26 = vmul.f32 -1.442695, %v904_v23 }
 0x401   :  { %v1911_v28 = vmul.f32 -1.442695, %v905_v24  ;;  %v1912_v37 = vmul.f32 -1.442695, %v907_v30 }
 0x402   :  { %2526 = vpow2.f32 %v1910_v26 }
 0x403   :  { %2528 = vpow2.f32 %v1911_v28 }
 0x404   :  { %2530 = vpow2.f32 %v1912_v37 }
 0x405   :  { %2532 = vtanh.f32 %v906_v38 }
 0x40c   :  { %v2527_v39 = vpop.eup %2526 }
 0x40d   :  { %v2529_v40 = vpop.eup %2528  ;;  %v911_v45 = vadd.f32 1.0, %v2527_v39 }
 0x40e   :  { %v917_v46 = vadd.f32 1.0, %v2529_v40  ;;  %v2531_v47 = vpop.eup %2530 }
 0x40f   :  { %2534 = vrcp.f32 %v911_v45  ;;  %v2533_v56 = vpop.eup %2532  ;;  %v924_v7 = vadd.f32 1.0, %v2531_v47 }
 0x410   :  { %2536 = vrcp.f32 %v917_v46 }
 0x411   :  { %2538 = vrcp.f32 %v924_v7 }
 0x419   :  { %v2535_v57 = vpop.eup %2534 }
 0x41a   :  { %v2537_v0 = vpop.eup %2536  ;;  %v931_v2 = vmul.f32 %v2535_v57, %v2533_v56 }
 0x41b   :  { %v930_v44 = vmul.f32 %v2537_v0, %v928_v63  ;;  %v2539_v9 = vpop.eup %2538 }
 0x41d   :  { %v3029_v8 = vadd.f32 %v931_v2, %v930_v44 }
 0x41f   :  { %2540 = vtanh.f32 %v3029_v8 }
 0x429   :  { %v2541_v11 = vpop.eup %2540 }
 0x42a   :  { %v934_v14 = vmul.f32 %v2541_v11, %v2539_v9  ;;  %v1117_v9 = vrot.slane %v3029_v8, 7 }
 0x42c   :  { %935 = vst [vmem:[#allocation7] sm:$0x4] %v934_v14  ;;  %v937_v16 = vrot.slane %v934_v14, 2 }
 0x42e   :  { %1004 = vmatmul.mubr.f32.vlgmr.msra.gmra.mrb[8].mxu0 %v937_v16  ;;  %1075 = vmatmul.mubr.f32.vlgmr.msra.gmra.mrb[10].mxu1 %v937_v16 }
 0x42f   :  { %2232 = vmatpush1.bf16.msra.mxu0 %v2780_v17  ;;  %2264 = vmatpush1.bf16.msra.mxu1 %v2863_v34 }
 0x430   :  { %2234 = vmatprep.subr.bf16.mxu0 %v2782_v20  ;;  %2266 = vmatprep.subr.bf16.mxu1 %v2866_v35 }
 0x431   :  { %1192 = vmatprep.mubr.f32.mxu0 %v2700_v1  ;;  %1263 = vmatprep.mubr.f32.mxu1 %v2700_v1 }
 0x433   :  { %2236 = vmatpush1.bf16.msra.mxu0 %v2791_v32  ;;  %2268 = vmatpush1.bf16.msra.mxu1 %v2870_v41 }
 0x434   :  { %2238 = vmatprep.subr.bf16.mxu0 %v2794_v36  ;;  %2270 = vmatprep.subr.bf16.mxu1 %v2874_v31 }
 0x437   :  { %2240 = vmatpush1.bf16.msra.mxu0 %v2800_v42  ;;  %2272 = vmatpush1.bf16.msra.mxu1 %v2877_v50 }
 0x438   :  { %2242 = vmatprep.subr.bf16.mxu0 %v2803_v43  ;;  %2274 = vmatprep.subr.bf16.mxu1 %v2880_v51 }
 0x43b   :  { %2244 = vmatpush1.bf16.msra.mxu0 %v2808_v48  ;;  %2276 = vmatpush1.bf16.msra.mxu1 %v2883_v58 }
 0x43c   :  { %2246 = vmatprep.subr.bf16.mxu0 %v2811_v49  ;;  %2278 = vmatprep.subr.bf16.mxu1 %v2886_v59 }
 0x43f   :  { %2248 = vmatpush1.bf16.msra.mxu0 %v2814_v54  ;;  %2280 = vmatpush1.bf16.msra.mxu1 %v2889_v5 }
 0x440   :  { %2250 = vmatprep.subr.bf16.mxu0 %v2817_v55  ;;  %2282 = vmatprep.subr.bf16.mxu1 %v2892_v6 }
 0x443   :  { %2252 = vmatpush1.bf16.msra.mxu0 %v2820_v60  ;;  %2284 = vmatpush1.bf16.msra.mxu1 %v2895_v12 }
 0x444   :  { %2254 = vmatprep.subr.bf16.mxu0 %v2823_v61  ;;  %2286 = vmatprep.subr.bf16.mxu1 %v2898_v13 }
 0x447   :  { %2256 = vmatpush1.bf16.msra.mxu0 %v2826_v3  ;;  %2288 = vmatpush1.bf16.msra.mxu1 %v2901_v21 }
 0x448   :  { %2258 = vmatprep.subr.bf16.mxu0 %v2829_v4  ;;  %2290 = vmatprep.subr.bf16.mxu1 %v2904_v22 }
 0x44b   :  { %2260 = vmatpush1.bf16.msra.mxu0 %v2833_v10  ;;  %2292 = vmatpush1.bf16.msra.mxu1 %v2907_v25 }
 0x44c   :  { %2294 = vmatprep.subr.bf16.mxu0 %v2775_v15  ;;  %2326 = vmatprep.subr.bf16.mxu1 %v2859_v27 }
 0x501   :  { %v1005_v62 = vpop.f32.mrb[8].mxu0  ;;  %v1076_v23 = vpop.f32.mrb[10].mxu1 }
 0x502   :  { %v1085_v24 = vrot.slane %v1005_v62, 5  ;;  %v1007_v26 = vpop.f32.mrb[9].mxu0  ;;  %v1078_v28 = vpop.f32.mrb[11].mxu1  ;;  %v1087_v45 = vrot.slane %v1076_v23, 5 }
 0x503   :  { %v1086_v29 = vrot.slane %v1007_v26, 5  ;;  %v1088_v39 = vrot.slane %v1078_v28, 5 }
 0x504   :  { %v1093_v30 = vadd.f32 %v1085_v24, %v2935_v53  ;;  %v1095_v47 = vadd.f32 %v1087_v45, %v2939_v18 }
 0x505   :  { %v1094_v33 = vadd.f32 %v1086_v29, %v2933_v52  ;;  %v1096_v40 = vadd.f32 %v1088_v39, %v2941_v19 }
 0x506   :  { %v1913_v37 = vmul.f32 -1.442695, %v1093_v30 }
 0x507   :  { %v1914_v38 = vmul.f32 -1.442695, %v1094_v33  ;;  %v1915_v46 = vmul.f32 -1.442695, %v1096_v40 }
 0x508   :  { %2542 = vpow2.f32 %v1913_v37 }
 0x509   :  { %2544 = vpow2.f32 %v1914_v38 }
 0x50a   :  { %2546 = vpow2.f32 %v1915_v46 }
 0x50b   :  { %2548 = vtanh.f32 %v1095_v47 }
 0x512   :  { %v2543_v56 = vpop.eup %2542 }
 0x513   :  { %v2545_v57 = vpop.eup %2544  ;;  %v1100_v63 = vadd.f32 1.0, %v2543_v56 }
 0x514   :  { %v1106_v0 = vadd.f32 1.0, %v2545_v57  ;;  %v2547_v2 = vpop.eup %2546 }
 0x515   :  { %2550 = vrcp.f32 %v1100_v63  ;;  %v2549_v7 = vpop.eup %2548  ;;  %v1113_v16 = vadd.f32 1.0, %v2547_v2 }
 0x516   :  { %2552 = vrcp.f32 %v1106_v0 }
 0x517   :  { %2554 = vrcp.f32 %v1113_v16 }
 0x51f   :  { %v2551_v44 = vpop.eup %2550 }
 0x520   :  { %v2553_v11 = vpop.eup %2552  ;;  %v1120_v14 = vmul.f32 %v2551_v44, %v2549_v7 }
 0x521   :  { %v1119_v62 = vmul.f32 %v2553_v11, %v1117_v9  ;;  %v2555_v24 = vpop.eup %2554 }
 0x523   :  { %v3071_v23 = vadd.f32 %v1120_v14, %v1119_v62 }
 0x525   :  { %2556 = vtanh.f32 %v3071_v23 }
 0x52f   :  { %v2557_v26 = vpop.eup %2556 }
 0x530   :  { %v1123_v28 = vmul.f32 %v2557_v26, %v2555_v24  ;;  %v1306_v24 = vrot.slane %v3071_v23, 7 }
 0x532   :  { %1124 = vst [vmem:[#allocation7] sm:$0x8] %v1123_v28  ;;  %v1126_v29 = vrot.slane %v1123_v28, 3 }
 0x534   :  { %1193 = vmatmul.mubr.f32.vlgmr.msra.gmra.mrb[10].mxu0 %v1126_v29  ;;  %1264 = vmatmul.mubr.f32.vlgmr.msra.gmra.mrb[12].mxu1 %v1126_v29 }
 0x535   :  { %2296 = vmatpush1.bf16.msra.mxu0 %v2780_v17  ;;  %2328 = vmatpush1.bf16.msra.mxu1 %v2863_v34 }
 0x536   :  { %2298 = vmatprep.subr.bf16.mxu0 %v2782_v20  ;;  %2330 = vmatprep.subr.bf16.mxu1 %v2866_v35 }
 0x537   :  { %1381 = vmatprep.mubr.f32.mxu0 %v2700_v1  ;;  %1452 = vmatprep.mubr.f32.mxu1 %v2700_v1 }
 0x539   :  { %2300 = vmatpush1.bf16.msra.mxu0 %v2791_v32  ;;  %2332 = vmatpush1.bf16.msra.mxu1 %v2870_v41 }
 0x53a   :  { %2302 = vmatprep.subr.bf16.mxu0 %v2794_v36  ;;  %2334 = vmatprep.subr.bf16.mxu1 %v2874_v31 }
 0x53d   :  { %2304 = vmatpush1.bf16.msra.mxu0 %v2800_v42  ;;  %2336 = vmatpush1.bf16.msra.mxu1 %v2877_v50 }
 0x53e   :  { %2306 = vmatprep.subr.bf16.mxu0 %v2803_v43  ;;  %2338 = vmatprep.subr.bf16.mxu1 %v2880_v51 }
 0x541   :  { %2308 = vmatpush1.bf16.msra.mxu0 %v2808_v48  ;;  %2340 = vmatpush1.bf16.msra.mxu1 %v2883_v58 }
 0x542   :  { %2310 = vmatprep.subr.bf16.mxu0 %v2811_v49  ;;  %2342 = vmatprep.subr.bf16.mxu1 %v2886_v59 }
 0x545   :  { %2312 = vmatpush1.bf16.msra.mxu0 %v2814_v54  ;;  %2344 = vmatpush1.bf16.msra.mxu1 %v2889_v5 }
 0x546   :  { %2314 = vmatprep.subr.bf16.mxu0 %v2817_v55  ;;  %2346 = vmatprep.subr.bf16.mxu1 %v2892_v6 }
 0x549   :  { %2316 = vmatpush1.bf16.msra.mxu0 %v2820_v60  ;;  %2348 = vmatpush1.bf16.msra.mxu1 %v2895_v12 }
 0x54a   :  { %2318 = vmatprep.subr.bf16.mxu0 %v2823_v61  ;;  %2350 = vmatprep.subr.bf16.mxu1 %v2898_v13 }
 0x54d   :  { %2320 = vmatpush1.bf16.msra.mxu0 %v2826_v3  ;;  %2352 = vmatpush1.bf16.msra.mxu1 %v2901_v21 }
 0x54e   :  { %2322 = vmatprep.subr.bf16.mxu0 %v2829_v4  ;;  %2354 = vmatprep.subr.bf16.mxu1 %v2904_v22 }
 0x551   :  { %2324 = vmatpush1.bf16.msra.mxu0 %v2833_v10  ;;  %2356 = vmatpush1.bf16.msra.mxu1 %v2907_v25 }
 0x552   :  { %2358 = vmatprep.subr.bf16.mxu0 %v2775_v15  ;;  %2390 = vmatprep.subr.bf16.mxu1 %v2859_v27 }
 0x607   :  { %v1194_v8 = vpop.f32.mrb[10].mxu0  ;;  %v1265_v30 = vpop.f32.mrb[12].mxu1 }
 0x608   :  { %v1274_v33 = vrot.slane %v1194_v8, 4  ;;  %v1196_v37 = vpop.f32.mrb[11].mxu0  ;;  %v1267_v38 = vpop.f32.mrb[13].mxu1  ;;  %v1276_v63 = vrot.slane %v1265_v30, 4 }
 0x609   :  { %v1275_v39 = vrot.slane %v1196_v37, 4  ;;  %v1277_v56 = vrot.slane %v1267_v38, 4 }
 0x60a   :  { %v1282_v40 = vadd.f32 %v1274_v33, %v2935_v53  ;;  %v1284_v2 = vadd.f32 %v1276_v63, %v2939_v18 }
 0x60b   :  { %v1283_v45 = vadd.f32 %v1275_v39, %v2933_v52  ;;  %v1285_v57 = vadd.f32 %v1277_v56, %v2941_v19 }
 0x60c   :  { %v1916_v46 = vmul.f32 -1.442695, %v1282_v40 }
 0x60d   :  { %v1917_v47 = vmul.f32 -1.442695, %v1283_v45  ;;  %v1918_v0 = vmul.f32 -1.442695, %v1285_v57 }
 0x60e   :  { %2558 = vpow2.f32 %v1916_v46 }
 0x60f   :  { %2560 = vpow2.f32 %v1917_v47 }
 0x610   :  { %2562 = vpow2.f32 %v1918_v0 }
 0x611   :  { %2564 = vtanh.f32 %v1284_v2 }
 0x618   :  { %v2559_v7 = vpop.eup %2558 }
 0x619   :  { %v2561_v44 = vpop.eup %2560  ;;  %v1289_v9 = vadd.f32 1.0, %v2559_v7 }
 0x61a   :  { %v1295_v11 = vadd.f32 1.0, %v2561_v44  ;;  %v2563_v14 = vpop.eup %2562 }
 0x61b   :  { %2566 = vrcp.f32 %v1289_v9  ;;  %v2565_v16 = vpop.eup %2564  ;;  %v1302_v29 = vadd.f32 1.0, %v2563_v14 }
 0x61c   :  { %2568 = vrcp.f32 %v1295_v11 }
 0x61d   :  { %2570 = vrcp.f32 %v1302_v29 }
 0x625   :  { %v2567_v62 = vpop.eup %2566 }
 0x626   :  { %v2569_v26 = vpop.eup %2568  ;;  %v1309_v28 = vmul.f32 %v2567_v62, %v2565_v16 }
 0x627   :  { %v1308_v8 = vmul.f32 %v2569_v26, %v1306_v24  ;;  %v2571_v33 = vpop.eup %2570 }
 0x629   :  { %v3113_v30 = vadd.f32 %v1309_v28, %v1308_v8 }
 0x62b   :  { %2572 = vtanh.f32 %v3113_v30  ;;  %v1495_v29 = vrot.slane %v3113_v30, 7 }
 0x635   :  { %v2573_v37 = vpop.eup %2572 }
 0x636   :  { %v1312_v38 = vmul.f32 %v2573_v37, %v2571_v33 }
 0x638   :  { %1313 = vst [vmem:[#allocation7] sm:$0x10] %v1312_v38  ;;  %v1315_v39 = vrot.slane %v1312_v38, 4 }
 0x63a   :  { %1382 = vmatmul.mubr.f32.vlgmr.msra.gmra.mrb[12].mxu0 %v1315_v39  ;;  %1453 = vmatmul.mubr.f32.vlgmr.msra.gmra.mrb[14].mxu1 %v1315_v39 }
 0x63b   :  { %2360 = vmatpush1.bf16.msra.mxu0 %v2780_v17  ;;  %2392 = vmatpush1.bf16.msra.mxu1 %v2863_v34 }
 0x63c   :  { %2362 = vmatprep.subr.bf16.mxu0 %v2782_v20  ;;  %2394 = vmatprep.subr.bf16.mxu1 %v2866_v35 }
 0x63d   :  { %1570 = vmatprep.mubr.f32.mxu0 %v2700_v1  ;;  %1641 = vmatprep.mubr.f32.mxu1 %v2700_v1 }
 0x63f   :  { %2364 = vmatpush1.bf16.msra.mxu0 %v2791_v32  ;;  %2396 = vmatpush1.bf16.msra.mxu1 %v2870_v41 }
 0x640   :  { %2366 = vmatprep.subr.bf16.mxu0 %v2794_v36  ;;  %2398 = vmatprep.subr.bf16.mxu1 %v2874_v31 }
 0x643   :  { %2368 = vmatpush1.bf16.msra.mxu0 %v2800_v42  ;;  %2400 = vmatpush1.bf16.msra.mxu1 %v2877_v50 }
 0x644   :  { %2370 = vmatprep.subr.bf16.mxu0 %v2803_v43  ;;  %2402 = vmatprep.subr.bf16.mxu1 %v2880_v51 }
 0x647   :  { %2372 = vmatpush1.bf16.msra.mxu0 %v2808_v48  ;;  %2404 = vmatpush1.bf16.msra.mxu1 %v2883_v58 }
 0x648   :  { %2374 = vmatprep.subr.bf16.mxu0 %v2811_v49  ;;  %2406 = vmatprep.subr.bf16.mxu1 %v2886_v59 }
 0x64b   :  { %2376 = vmatpush1.bf16.msra.mxu0 %v2814_v54  ;;  %2408 = vmatpush1.bf16.msra.mxu1 %v2889_v5 }
 0x64c   :  { %2378 = vmatprep.subr.bf16.mxu0 %v2817_v55  ;;  %2410 = vmatprep.subr.bf16.mxu1 %v2892_v6 }
 0x64f   :  { %2380 = vmatpush1.bf16.msra.mxu0 %v2820_v60  ;;  %2412 = vmatpush1.bf16.msra.mxu1 %v2895_v12 }
 0x650   :  { %2382 = vmatprep.subr.bf16.mxu0 %v2823_v61  ;;  %2414 = vmatprep.subr.bf16.mxu1 %v2898_v13 }
 0x653   :  { %2384 = vmatpush1.bf16.msra.mxu0 %v2826_v3  ;;  %2416 = vmatpush1.bf16.msra.mxu1 %v2901_v21 }
 0x654   :  { %2386 = vmatprep.subr.bf16.mxu0 %v2829_v4  ;;  %2418 = vmatprep.subr.bf16.mxu1 %v2904_v22 }
 0x657   :  { %2388 = vmatpush1.bf16.msra.mxu0 %v2833_v10  ;;  %2420 = vmatpush1.bf16.msra.mxu1 %v2907_v25 }
 0x658   :  { %2422 = vmatprep.subr.bf16.mxu0 %v2775_v15  ;;  %2454 = vmatprep.subr.bf16.mxu1 %v2859_v27 }
 0x70d   :  { %v1383_v23 = vpop.f32.mrb[12].mxu0  ;;  %v1454_v40 = vpop.f32.mrb[14].mxu1 }
 0x70e   :  { %v1463_v45 = vrot.slane %v1383_v23, 3  ;;  %v1385_v46 = vpop.f32.mrb[13].mxu0  ;;  %v1456_v47 = vpop.f32.mrb[15].mxu1  ;;  %v1465_v15 = vrot.slane %v1454_v40, 3 }
 0x70f   :  { %v1464_v56 = vrot.slane %v1385_v46, 3  ;;  %v1466_v7 = vrot.slane %v1456_v47, 3 }
 0x710   :  { %v1471_v57 = vadd.f32 %v1463_v45, %v2935_v53  ;;  %v1473_v27 = vadd.f32 %v1465_v15, %v2939_v18 }
 0x711   :  { %v1472_v63 = vadd.f32 %v1464_v56, %v2933_v52  ;;  %v1474_v44 = vadd.f32 %v1466_v7, %v2941_v19 }
 0x712   :  { %v1919_v0 = vmul.f32 -1.442695, %v1471_v57 }
 0x713   :  { %v1920_v2 = vmul.f32 -1.442695, %v1472_v63  ;;  %v1921_v9 = vmul.f32 -1.442695, %v1474_v44 }
 0x714   :  { %2574 = vpow2.f32 %v1919_v0 }
 0x715   :  { %2576 = vpow2.f32 %v1920_v2 }
 0x716   :  { %2578 = vpow2.f32 %v1921_v9 }
 0x717   :  { %2580 = vtanh.f32 %v1473_v27 }
 0x71e   :  { %v2575_v11 = vpop.eup %2574 }
 0x71f   :  { %v2577_v14 = vpop.eup %2576  ;;  %v1478_v16 = vadd.f32 1.0, %v2575_v11 }
 0x720   :  { %v1484_v62 = vadd.f32 1.0, %v2577_v14  ;;  %v2579_v24 = vpop.eup %2578 }
 0x721   :  { %2582 = vrcp.f32 %v1478_v16  ;;  %v2581_v26 = vpop.eup %2580  ;;  %v1491_v37 = vadd.f32 1.0, %v2579_v24 }
 0x722   :  { %2584 = vrcp.f32 %v1484_v62 }
 0x723   :  { %2586 = vrcp.f32 %v1491_v37 }
 0x72b   :  { %v2583_v28 = vpop.eup %2582 }
 0x72c   :  { %v2585_v8 = vpop.eup %2584  ;;  %v1498_v33 = vmul.f32 %v2583_v28, %v2581_v26 }
 0x72d   :  { %v1497_v38 = vmul.f32 %v2585_v8, %v1495_v29  ;;  %v2587_v23 = vpop.eup %2586 }
 0x72f   :  { %v3155_v39 = vadd.f32 %v1498_v33, %v1497_v38 }
 0x731   :  { %2588 = vtanh.f32 %v3155_v39 }
 0x73b   :  { %v2589_v40 = vpop.eup %2588 }
 0x73c   :  { %v1501_v45 = vmul.f32 %v2589_v40, %v2587_v23 }
 0x73e   :  { %1502 = vst [vmem:[#allocation7] sm:$0x20] %v1501_v45  ;;  %v1504_v46 = vrot.slane %v1501_v45, 5 }
 0x740   :  { %1571 = vmatmul.mubr.f32.vlgmr.msra.gmra.mrb[14].mxu0 %v1504_v46  ;;  %1642 = vmatmul.mubr.f32.vlgmr.msra.gmra.mrb[16].mxu1 %v1504_v46 }
 0x741   :  { %2424 = vmatpush1.bf16.msra.mxu0 %v2780_v17  ;;  %2456 = vmatpush1.bf16.msra.mxu1 %v2863_v34 }
 0x742   :  { %2426 = vmatprep.subr.bf16.mxu0 %v2782_v20  ;;  %2458 = vmatprep.subr.bf16.mxu1 %v2866_v35 }
 0x743   :  { %1759 = vmatprep.mubr.f32.mxu0 %v2700_v1  ;;  %1830 = vmatprep.mubr.f32.mxu1 %v2700_v1 }
 0x745   :  { %2428 = vmatpush1.bf16.msra.mxu0 %v2791_v32  ;;  %2460 = vmatpush1.bf16.msra.mxu1 %v2870_v41 }
 0x746   :  { %2430 = vmatprep.subr.bf16.mxu0 %v2794_v36  ;;  %2462 = vmatprep.subr.bf16.mxu1 %v2874_v31 }
 0x749   :  { %2432 = vmatpush1.bf16.msra.mxu0 %v2800_v42  ;;  %2464 = vmatpush1.bf16.msra.mxu1 %v2877_v50 }
 0x74a   :  { %2434 = vmatprep.subr.bf16.mxu0 %v2803_v43  ;;  %2466 = vmatprep.subr.bf16.mxu1 %v2880_v51 }
 0x74d   :  { %2436 = vmatpush1.bf16.msra.mxu0 %v2808_v48  ;;  %2468 = vmatpush1.bf16.msra.mxu1 %v2883_v58  ;;  %v1684_v58 = vrot.slane %v3155_v39, 7 }
 0x74e   :  { %2438 = vmatprep.subr.bf16.mxu0 %v2811_v49  ;;  %2470 = vmatprep.subr.bf16.mxu1 %v2886_v59 }
 0x751   :  { %2440 = vmatpush1.bf16.msra.mxu0 %v2814_v54  ;;  %2472 = vmatpush1.bf16.msra.mxu1 %v2889_v5 }
 0x752   :  { %2442 = vmatprep.subr.bf16.mxu0 %v2817_v55  ;;  %2474 = vmatprep.subr.bf16.mxu1 %v2892_v6 }
 0x755   :  { %2444 = vmatpush1.bf16.msra.mxu0 %v2820_v60  ;;  %2476 = vmatpush1.bf16.msra.mxu1 %v2895_v12 }
 0x756   :  { %2446 = vmatprep.subr.bf16.mxu0 %v2823_v61  ;;  %2478 = vmatprep.subr.bf16.mxu1 %v2898_v13 }
 0x759   :  { %2448 = vmatpush1.bf16.msra.mxu0 %v2826_v3  ;;  %2480 = vmatpush1.bf16.msra.mxu1 %v2901_v21 }
 0x75a   :  { %2450 = vmatprep.subr.bf16.mxu0 %v2829_v4  ;;  %2482 = vmatprep.subr.bf16.mxu1 %v2904_v22 }
 0x75d   :  { %2452 = vmatpush1.bf16.msra.mxu0 %v2833_v10  ;;  %2484 = vmatpush1.bf16.msra.mxu1 %v2907_v25 }
 0x813   :  { %v1572_v1 = vpop.f32.mrb[14].mxu0  ;;  %v1643_v17 = vpop.f32.mrb[16].mxu1 }
 0x814   :  { %v1652_v20 = vrot.slane %v1572_v1, 2  ;;  %v1574_v32 = vpop.f32.mrb[15].mxu0  ;;  %v1645_v36 = vpop.f32.mrb[17].mxu1  ;;  %v1654_v61 = vrot.slane %v1643_v17, 2 }
 0x815   :  { %v1653_v42 = vrot.slane %v1574_v32, 2  ;;  %v1655_v55 = vrot.slane %v1645_v36, 2 }
 0x816   :  { %v1660_v43 = vadd.f32 %v1652_v20, %v2935_v53  ;;  %v1662_v4 = vadd.f32 %v1654_v61, %v2939_v18 }
 0x817   :  { %v1661_v48 = vadd.f32 %v1653_v42, %v2933_v52  ;;  %v1663_v60 = vadd.f32 %v1655_v55, %v2941_v19 }
 0x818   :  { %v1922_v49 = vmul.f32 -1.442695, %v1660_v43 }
 0x819   :  { %v1923_v54 = vmul.f32 -1.442695, %v1661_v48  ;;  %v1924_v3 = vmul.f32 -1.442695, %v1663_v60 }
 0x81a   :  { %2590 = vpow2.f32 %v1922_v49 }
 0x81b   :  { %2592 = vpow2.f32 %v1923_v54 }
 0x81c   :  { %2594 = vpow2.f32 %v1924_v3 }
 0x81d   :  { %2596 = vtanh.f32 %v1662_v4 }
 0x824   :  { %v2591_v10 = vpop.eup %2590 }
 0x825   :  { %v2593_v34 = vpop.eup %2592  ;;  %v1667_v35 = vadd.f32 1.0, %v2591_v10 }
 0x826   :  { %v1673_v41 = vadd.f32 1.0, %v2593_v34  ;;  %v2595_v31 = vpop.eup %2594 }
 0x827   :  { %2598 = vrcp.f32 %v1667_v35  ;;  %v2597_v50 = vpop.eup %2596  ;;  %v1680_v6 = vadd.f32 1.0, %v2595_v31 }
 0x828   :  { %2600 = vrcp.f32 %v1673_v41 }
 0x829   :  { %2602 = vrcp.f32 %v1680_v6 }
 0x831   :  { %v2599_v51 = vpop.eup %2598 }
 0x832   :  { %v2601_v59 = vpop.eup %2600  ;;  %v1687_v5 = vmul.f32 %v2599_v51, %v2597_v50 }
 0x833   :  { %v1686_v12 = vmul.f32 %v2601_v59, %v1684_v58  ;;  %v2603_v21 = vpop.eup %2602 }
 0x835   :  { %v1688_v13 = vadd.f32 %v1687_v5, %v1686_v12 }
 0x837   :  { %2604 = vtanh.f32 %v1688_v13  ;;  %v1873_v33 = vrot.slane %v1688_v13, 7 }
 0x841   :  { %v2605_v22 = vpop.eup %2604 }
 0x842   :  { %v1690_v25 = vmul.f32 %v2605_v22, %v2603_v21 }
 0x844   :  { %1691 = vst [vmem:[#allocation7] sm:$0x40] %v1690_v25  ;;  %v1693_v30 = vrot.slane %v1690_v25, 6 }
 0x846   :  { %1760 = vmatmul.mubr.f32.vlgmr.msra.gmra.mrb[16].mxu0 %v1693_v30  ;;  %1831 = vmatmul.mubr.f32.vlgmr.msra.gmra.mrb[18].mxu1 %v1693_v30 }
 0x919   :  { %v1761_v47 = vpop.f32.mrb[16].mxu0  ;;  %v1832_v56 = vpop.f32.mrb[18].mxu1 }
 0x91a   :  { %v1841_v57 = vrot.slane %v1761_v47, 1  ;;  %v1763_v63 = vpop.f32.mrb[17].mxu0  ;;  %v1834_v0 = vpop.f32.mrb[19].mxu1  ;;  %v1843_v14 = vrot.slane %v1832_v56, 1 }
 0x91b   :  { %v1842_v2 = vrot.slane %v1763_v63, 1  ;;  %v1844_v27 = vrot.slane %v1834_v0, 1 }
 0x91c   :  { %v1849_v7 = vadd.f32 %v1841_v57, %v2935_v53  ;;  %v1851_v62 = vadd.f32 %v1843_v14, %v2939_v18 }
 0x91d   :  { %v1850_v44 = vadd.f32 %v1842_v2, %v2933_v52  ;;  %v1852_v11 = vadd.f32 %v1844_v27, %v2941_v19 }
 0x91e   :  { %v1925_v15 = vmul.f32 -1.442695, %v1849_v7 }
 0x91f   :  { %v1926_v9 = vmul.f32 -1.442695, %v1850_v44  ;;  %v1927_v16 = vmul.f32 -1.442695, %v1852_v11 }
 0x920   :  { %2606 = vpow2.f32 %v1925_v15 }
 0x921   :  { %2608 = vpow2.f32 %v1926_v9 }
 0x922   :  { %2610 = vpow2.f32 %v1927_v16 }
 0x923   :  { %2612 = vtanh.f32 %v1851_v62 }
 0x92a   :  { %v2607_v24 = vpop.eup %2606 }
 0x92b   :  { %v2609_v26 = vpop.eup %2608  ;;  %v1856_v28 = vadd.f32 1.0, %v2607_v24 }
 0x92c   :  { %v1862_v29 = vadd.f32 1.0, %v2609_v26  ;;  %v2611_v52 = vpop.eup %2610 }
 0x92d   :  { %2614 = vrcp.f32 %v1856_v28  ;;  %v2613_v53 = vpop.eup %2612  ;;  %v1869_v39 = vadd.f32 1.0, %v2611_v52 }
 0x92e   :  { %2616 = vrcp.f32 %v1862_v29 }
 0x92f   :  { %2618 = vrcp.f32 %v1869_v39 }
 0x937   :  { %v2615_v8 = vpop.eup %2614 }
 0x938   :  { %v2617_v37 = vpop.eup %2616  ;;  %v1876_v38 = vmul.f32 %v2615_v8, %v2613_v53 }
 0x939   :  { %v1875_v19 = vmul.f32 %v2617_v37, %v1873_v33  ;;  %v2619_v18 = vpop.eup %2618 }
 0x93b   :  { %v1877_v23 = vadd.f32 %v1876_v38, %v1875_v19 }
 0x93d   :  { %2620 = vtanh.f32 %v1877_v23 }
 0x947   :  { %v2621_v40 = vpop.eup %2620 }
 0x948   :  { %v1879_v45 = vmul.f32 %v2621_v40, %v2619_v18 }
 0x94a   :  { %1880 = vst [vmem:[#allocation7] sm:$0x80] %v1879_v45 }
 0x94b   :  { %2677 = shalt.err (!%p2674_p6)
}
 0x94c   :  { %s2678_s8 = scalar_lea.hbm %s3216_s5, 128 }
 0x94d   :  { %p2679_p7 = scmp.ne.s32.totalorder %s3216_s5, %s2678_s8  ;;  %p2682_p8 = scmp.lt.u32.totalorder %s2678_s8, %s3216_s5 }
 0x94f   :  { %p2684_p9 = pnand %p2682_p8, %p2679_p7 }
 0x951   :  { %2687 = shalt.err (!%p2684_p9)
}
 0x952   :  { %1890 = dma.vmem_to_hbm [thread:$0]  %s1888_s29, 128, %s3216_s5, [#allocation4]  }
 0x953   :  { %2692 = dma.done.wait [#allocation4], 128  }
 0x954   :  { %2693 = vsyncadd [#allocation4], 4294967168 }
 0x955   :  { %1894 = vsyncpa [#allocation3], 1 }
 0x956   :  { %1895 = vsyncpa [#allocation6], 1 }
 0x957   :  { %1896 = vsyncpa [#allocation4], 1 }

</bundles_post_ra>
